<compile_context>
chip_gen: v7x
topology: tpu7x:2x2x1
jax: 0.10.0
libtpu: 0.0.40
codegen_flags: <defaults>
</compile_context>

<pallas_src>
import functools

import jax
import jax.numpy as jnp
from jax import lax
from jax.experimental import pallas as pl
from jax.experimental.pallas import tpu as pltpu


def _mlp_kernel(x_ref, w1_ref, c1_ref, w2_ref, c2_ref, w3_ref, b3_ref, o_ref):
    """Fused 3-layer MLP (bias+BN folded, ReLU) for one batch tile.

    First two matmuls: bf16 operands on the MXU, f32 accumulation.
    Folded bias/BN add + ReLU: f32 on the VPU.
    Last layer: f32 NT dot_general against the (8, H2) w3 slab (row 0 real),
    producing the result already transposed to lane-major (rows, batch).
    """
    x = x_ref[...].astype(jnp.bfloat16)                    # in-kernel cast (VPU)

    # Linear(input_dim -> hidden) with eval-BN folded in, then ReLU.
    h1 = jnp.dot(x, w1_ref[...], preferred_element_type=jnp.float32)
    h1 = jnp.maximum(h1 + c1_ref[...], 0.0)

    # Linear(hidden -> hidden//2) with eval-BN folded in, then ReLU.
    h2 = jnp.dot(h1.astype(jnp.bfloat16), w2_ref[...],
                 preferred_element_type=jnp.float32)
    h2 = jnp.maximum(h2 + c2_ref[...], 0.0)

    # Final Linear(hidden//2 -> 1): contract H2 of the w3 slab against H2 of
    # h2 -> (8, batch_tile) already lane-major; keep the real row 0, add the
    # bias, store lane-dense (1, batch_tile).
    out_t = lax.dot_general(w3_ref[...], h2, (((1,), (1,)), ((), ())),
                            preferred_element_type=jnp.float32)
    o_ref[...] = (out_t[0:1, :] + b3_ref[...]).astype(o_ref.dtype)


def clip_regressor_forward(x, folded_params, *, batch_tile=None,
                           single_buffer_weights=True):
    """x: (B, input_dim) float32.  folded_params from fold_params().  -> (B, 1) f32.

    Tiling guidance: single-TensorCore chips (v5e/v6e) -> batch_tile == B (one
    grid step); v7x -> batch_tile == B // (2*k) so both TensorCores get an
    equal share of the "parallel" batch axis.
    """
    B, D_in = x.shape
    w1, c1, w2, c2, w3r, b3p = folded_params
    H = w1.shape[1]
    H2 = w2.shape[1]
    assert w1.shape == (D_in, H) and c1.shape == (1, H)
    assert w2.shape == (H, H2) and c2.shape == (1, H2)
    assert w3r.shape == (8, H2) and b3p.shape == (1, 1)

    if batch_tile is None:
        batch_tile = min(B, 1024)
    batch_tile = min(batch_tile, B)
    assert B % batch_tile == 0
    # bf16 packs 16 rows per sublane-packed vreg -> keep tiles 16-row aligned.
    assert batch_tile % 16 == 0 or batch_tile == B

    num_tiles = B // batch_tile
    grid = (num_tiles,)

    def const_spec(shape):
        if single_buffer_weights:
            # Constant index_map across the grid -> no re-DMA; one VMEM buffer
            # is enough (skips the wasted double-buffer copy of every weight).
            return pl.BlockSpec(shape, lambda i: (0, 0),
                                pipeline_mode=pl.Buffered(1))
        return pl.BlockSpec(shape, lambda i: (0, 0))

    in_specs = [
        pl.BlockSpec((batch_tile, D_in), lambda i: (i, 0)),  # x tile (f32)
        const_spec((D_in, H)),                               # w1' (bf16, BN folded)
        const_spec((1, H)),                                  # c1  (f32 folded bias)
        const_spec((H, H2)),                                 # w2' (bf16, BN folded)
        const_spec((1, H2)),                                 # c2  (f32 folded bias)
        const_spec((8, H2)),                                 # w3 slab (f32, row 0 real)
        const_spec((1, 1)),                                  # b3  (f32)
    ]
    # Lane-dense transposed output: one (1, batch_tile) row per grid step.
    out_specs = pl.BlockSpec((None, 1, batch_tile), lambda i: (i, 0, 0))

    flops = 2 * B * (D_in * H + H * H2 + 8 * H2)
    bytes_accessed = (
        x.size * 4                                      # x read once (f32)
        + (w1.size + w2.size) * 2                       # matmul weights (bf16)
        + (c1.size + c2.size + w3r.size + b3p.size) * 4  # folded biases / w3 (f32)
        + B * 4                                         # un-padded f32 output
    )
    cost = pl.CostEstimate(flops=flops, transcendentals=0,
                           bytes_accessed=bytes_accessed)

    # Rough VMEM need; raise the scoped limit only if a large batch_tile would
    # exceed the default (16 MiB on v5e, 32 MiB on v6e/v7x).
    weight_vmem = ((w1.size + w2.size) * 2
                   + (c1.size + c2.size + w3r.size + b3p.size) * 4)
    est_vmem = (2 * batch_tile * D_in * 4               # x tile, double-buffered
                + 2 * batch_tile * 4                    # out tile, double-buffered
                + 2 * weight_vmem                       # weights (worst case 2 bufs)
                + 2 * batch_tile * (H + H2) * 4)        # h1/h2 intermediates
    cp_kwargs = dict(dimension_semantics=("parallel",))
    if est_vmem > 16 * 1024 * 1024:
        cp_kwargs["vmem_limit_bytes"] = int(est_vmem * 3 // 2)

    out_t = pl.pallas_call(
        _mlp_kernel,
        out_shape=jax.ShapeDtypeStruct((num_tiles, 1, batch_tile), jnp.float32),
        grid_spec=pltpu.PrefetchScalarGridSpec(
            num_scalar_prefetch=0,
            grid=grid,
            in_specs=in_specs,
            out_specs=out_specs,
        ),
        compiler_params=pltpu.CompilerParams(**cp_kwargs),
        cost_estimate=cost,
    )(x, w1, c1, w2, c2, w3r, b3p)

    # (num_tiles, 1, batch_tile) is contiguous in batch order: free reshape.
    return out_t.reshape(B, 1)


def init_raw_params(key, input_dim, hidden_dim):
    """PyTorch-style params (Linear weights stored pre-transposed as (in, out))."""
    h2 = hidden_dim // 2
    ks = jax.random.split(key, 14)

    def linear_init(kw, kb, fan_in, fan_out):
        bound = 1.0 / jnp.sqrt(fan_in)
        w = jax.random.uniform(kw, (fan_in, fan_out), jnp.float32, -bound, bound)
        b = jax.random.uniform(kb, (fan_out,), jnp.float32, -bound, bound)
        return w, b

    def bn_init(kg, kb, km, kv, dim):
        # Non-trivial (but deterministic) BN stats so the folding is exercised.
        gamma = jax.random.uniform(kg, (dim,), jnp.float32, 0.5, 1.5)
        beta = 0.1 * jax.random.normal(kb, (dim,), jnp.float32)
        mean = 0.1 * jax.random.normal(km, (dim,), jnp.float32)
        var = jax.random.uniform(kv, (dim,), jnp.float32, 0.5, 1.5)
        return gamma, beta, mean, var

    w1, b1 = linear_init(ks[0], ks[1], input_dim, hidden_dim)
    g1, be1, m1, v1 = bn_init(ks[2], ks[3], ks[4], ks[5], hidden_dim)
    w2, b2 = linear_init(ks[6], ks[7], hidden_dim, h2)
    g2, be2, m2, v2 = bn_init(ks[8], ks[9], ks[10], ks[11], h2)
    w3, b3 = linear_init(ks[12], ks[13], h2, 1)
    return (w1, b1, g1, be1, m1, v1, w2, b2, g2, be2, m2, v2, w3, b3)


def fold_params(raw, eps=1e-5):
    """Fold Linear bias + eval-mode BN into weights; cast matmul weights to bf16."""
    (w1, b1, g1, be1, m1, v1, w2, b2, g2, be2, m2, v2, w3, b3) = raw

    def fold(w, b, gamma, beta, mean, var):
        scale = gamma / jnp.sqrt(var + eps)                        # (out,)
        wf = (w * scale[None, :]).astype(jnp.bfloat16)             # (in, out)
        cf = ((b - mean) * scale + beta).reshape(1, -1).astype(jnp.float32)
        return wf, cf

    w1f, c1 = fold(w1, b1, g1, be1, m1, v1)
    w2f, c2 = fold(w2, b2, g2, be2, m2, v2)

    # Final layer: keep f32; lay w3 out as an (8, H2) slab (row 0 real, rows
    # 1..7 zero) so the NT matmul's M dim is sublane-aligned.
    h2_dim = w3.shape[0]
    w3r = jnp.zeros((8, h2_dim), jnp.float32).at[0, :].set(w3[:, 0])
    b3p = b3.reshape(1, 1).astype(jnp.float32)
    return (w1f, c1, w2f, c2, w3r, b3p)


def reference_forward(x, raw, eps=1e-5):
    """Pure-JAX f32 reference of the eval-mode PyTorch forward (Dropout = identity)."""
    (w1, b1, g1, be1, m1, v1, w2, b2, g2, be2, m2, v2, w3, b3) = raw
    h = x @ w1 + b1
    h = (h - m1) * (g1 / jnp.sqrt(v1 + eps)) + be1
    h = jnp.maximum(h, 0.0)
    h = h @ w2 + b2
    h = (h - m2) * (g2 / jnp.sqrt(v2 + eps)) + be2
    h = jnp.maximum(h, 0.0)
    return h @ w3 + b3


if __name__ == "__main__":
    # Lane-friendly small shapes consistent with the module's (batch, input_dim)
    # forward: feature dims multiples of 128.  batch_tile=128 gives a 2-step
    # even "parallel" grid (both v7x TensorCores busy); on single-TC v5e/v6e
    # pass batch_tile=B to collapse to one grid step.
    B, INPUT_DIM, HIDDEN_DIM = 256, 256, 256   # hidden//2 = 128

    key = jax.random.PRNGKey(0)
    kx, kp = jax.random.split(key)
    x = jax.random.normal(kx, (B, INPUT_DIM), jnp.float32)
    raw = init_raw_params(kp, INPUT_DIM, HIDDEN_DIM)
    folded = fold_params(raw)

    def run(single_buffer_weights):
        fwd = jax.jit(functools.partial(clip_regressor_forward, batch_tile=128,
                                        single_buffer_weights=single_buffer_weights))
        return jax.block_until_ready(fwd(x, folded))

    try:
        out = run(True)
    except Exception:
        # TODO(synk): this JAX build does not honor pipeline_mode=pl.Buffered(1)
        # on pallas_call BlockSpecs; fall back to default double-buffered weights.
        out = run(False)

    ref = reference_forward(x, raw)
    assert out.shape == (B, 1)
    # bf16 matmuls with f32 accumulation vs. pure-f32 reference.
    err = jnp.max(jnp.abs(out - ref))
    assert jnp.allclose(out, ref, atol=5e-2, rtol=5e-2), (
        f"mismatch vs JAX reference, max abs err = {err}")

    print("KERNEL_OK")
</pallas_src>

<mosaic_0001>
module attributes {stable_mosaic.version = 11 : i64} {
  func.func @_mlp_kernel(%arg0: i32, %arg1: memref<128x256xf32, #tpu.memory_space<vmem>>, %arg2: memref<256x256xbf16, #tpu.memory_space<vmem>>, %arg3: memref<1x256xf32, #tpu.memory_space<vmem>>, %arg4: memref<256x128xbf16, #tpu.memory_space<vmem>>, %arg5: memref<1x128xf32, #tpu.memory_space<vmem>>, %arg6: memref<8x128xf32, #tpu.memory_space<vmem>>, %arg7: memref<1x1xf32, #tpu.memory_space<vmem>>, %arg8: memref<1x1x128xf32, #tpu.memory_space<vmem>>) attributes {dimension_semantics = [#tpu.dimension_semantics<parallel>], iteration_bounds = array<i64: 2>, scalar_prefetch = 0 : i64, scratch_operands = 0 : i64, tpu.core_type = #tpu.core_type<tc>, window_params = [{transform_indices = @transform_0, window_bounds = array<i64: 128, 256>}, {pipeline_mode = #tpu.pipeline_mode<synchronous>, transform_indices = @transform_1, window_bounds = array<i64: 256, 256>}, {pipeline_mode = #tpu.pipeline_mode<synchronous>, transform_indices = @transform_2, window_bounds = array<i64: 1, 256>}, {pipeline_mode = #tpu.pipeline_mode<synchronous>, transform_indices = @transform_3, window_bounds = array<i64: 256, 128>}, {pipeline_mode = #tpu.pipeline_mode<synchronous>, transform_indices = @transform_4, window_bounds = array<i64: 1, 128>}, {pipeline_mode = #tpu.pipeline_mode<synchronous>, transform_indices = @transform_5, window_bounds = array<i64: 8, 128>}, {pipeline_mode = #tpu.pipeline_mode<synchronous>, transform_indices = @transform_6, window_bounds = array<i64: 1, 1>}, {transform_indices = @transform_7, window_bounds = array<i64: 1, 1, 128>}]} {
    %c0 = arith.constant 0 : index
    %c0_0 = arith.constant 0 : index
    %0 = vector.load %arg1[%c0, %c0_0] : memref<128x256xf32, #tpu.memory_space<vmem>>, vector<128x256xf32>
    %1 = arith.truncf %0 : vector<128x256xf32> to vector<128x256xbf16>
    %c0_1 = arith.constant 0 : index
    %c0_2 = arith.constant 0 : index
    %2 = vector.load %arg2[%c0_1, %c0_2] : memref<256x256xbf16, #tpu.memory_space<vmem>>, vector<256x256xbf16>
    %cst = arith.constant dense<0.000000e+00> : vector<128x256xf32>
    %3 = tpu.matmul %1, %2, %cst {dimension_numbers = #tpu.dot_dimension_numbers<[1], [0], [0], [1], [0, 0, 1, 1], [], []>} : vector<128x256xbf16>, vector<256x256xbf16>, vector<128x256xf32> -> vector<128x256xf32>
    %c0_3 = arith.constant 0 : index
    %c0_4 = arith.constant 0 : index
    %4 = vector.load %arg3[%c0_3, %c0_4] : memref<1x256xf32, #tpu.memory_space<vmem>>, vector<1x256xf32>
    %5 = vector.broadcast %4 : vector<1x256xf32> to vector<128x256xf32>
    %6 = arith.addf %3, %5 : vector<128x256xf32>
    %cst_5 = arith.constant 0.000000e+00 : f32
    %7 = vector.broadcast %cst_5 : f32 to vector<128x256xf32>
    %8 = arith.maximumf %6, %7 : vector<128x256xf32>
    %9 = arith.truncf %8 : vector<128x256xf32> to vector<128x256xbf16>
    %c0_6 = arith.constant 0 : index
    %c0_7 = arith.constant 0 : index
    %10 = vector.load %arg4[%c0_6, %c0_7] : memref<256x128xbf16, #tpu.memory_space<vmem>>, vector<256x128xbf16>
    %cst_8 = arith.constant dense<0.000000e+00> : vector<128x128xf32>
    %11 = tpu.matmul %9, %10, %cst_8 {dimension_numbers = #tpu.dot_dimension_numbers<[1], [0], [0], [1], [0, 0, 1, 1], [], []>} : vector<128x256xbf16>, vector<256x128xbf16>, vector<128x128xf32> -> vector<128x128xf32>
    %c0_9 = arith.constant 0 : index
    %c0_10 = arith.constant 0 : index
    %12 = vector.load %arg5[%c0_9, %c0_10] : memref<1x128xf32, #tpu.memory_space<vmem>>, vector<1x128xf32>
    %13 = vector.broadcast %12 : vector<1x128xf32> to vector<128x128xf32>
    %14 = arith.addf %11, %13 : vector<128x128xf32>
    %cst_11 = arith.constant 0.000000e+00 : f32
    %15 = vector.broadcast %cst_11 : f32 to vector<128x128xf32>
    %16 = arith.maximumf %14, %15 : vector<128x128xf32>
    %c0_12 = arith.constant 0 : index
    %c0_13 = arith.constant 0 : index
    %17 = vector.load %arg6[%c0_12, %c0_13] : memref<8x128xf32, #tpu.memory_space<vmem>>, vector<8x128xf32>
    %cst_14 = arith.constant dense<0.000000e+00> : vector<8x128xf32>
    %18 = tpu.matmul %17, %16, %cst_14 {dimension_numbers = #tpu.dot_dimension_numbers<[1], [1], [0], [0], [0, 0, 1, 0], [], []>} : vector<8x128xf32>, vector<128x128xf32>, vector<8x128xf32> -> vector<8x128xf32>
    %19 = vector.extract_strided_slice %18 {offsets = [0, 0], sizes = [1, 128], strides = [1, 1]} : vector<8x128xf32> to vector<1x128xf32>
    %c0_15 = arith.constant 0 : index
    %c0_16 = arith.constant 0 : index
    %20 = vector.load %arg7[%c0_15, %c0_16] : memref<1x1xf32, #tpu.memory_space<vmem>>, vector<1x1xf32>
    %21 = vector.broadcast %20 : vector<1x1xf32> to vector<1x128xf32>
    %22 = arith.addf %19, %21 : vector<1x128xf32>
    %c0_17 = arith.constant 0 : index
    %c0_18 = arith.constant 0 : index
    %c0_19 = arith.constant 0 : index
    %23 = vector.load %arg8[%c0_17, %c0_18, %c0_19] : memref<1x1x128xf32, #tpu.memory_space<vmem>>, vector<1x1x128xf32>
    %24 = vector.shape_cast %23 : vector<1x1x128xf32> to vector<1x128xf32>
    %25 = vector.shape_cast %22 : vector<1x128xf32> to vector<1x1x128xf32>
    tpu.vector_store %arg8[%c0_17, %c0_18, %c0_19], %25 {strides = array<i32>} : memref<1x1x128xf32, #tpu.memory_space<vmem>>, vector<1x1x128xf32>,
    return
  }
  func.func @transform_0(%arg0: i32) -> (i32, i32) {
    %c0_i32 = arith.constant 0 : i32
    %c0_i32_0 = arith.constant 0 : i32
    return %arg0, %c0_i32 : i32, i32
  }
  func.func @transform_1(%arg0: i32) -> (i32, i32) {
    %c0_i32 = arith.constant 0 : i32
    %c0_i32_0 = arith.constant 0 : i32
    %c0_i32_1 = arith.constant 0 : i32
    return %c0_i32, %c0_i32_0 : i32, i32
  }
  func.func @transform_2(%arg0: i32) -> (i32, i32) {
    %c0_i32 = arith.constant 0 : i32
    %c0_i32_0 = arith.constant 0 : i32
    %c0_i32_1 = arith.constant 0 : i32
    return %c0_i32, %c0_i32_0 : i32, i32
  }
  func.func @transform_3(%arg0: i32) -> (i32, i32) {
    %c0_i32 = arith.constant 0 : i32
    %c0_i32_0 = arith.constant 0 : i32
    %c0_i32_1 = arith.constant 0 : i32
    return %c0_i32, %c0_i32_0 : i32, i32
  }
  func.func @transform_4(%arg0: i32) -> (i32, i32) {
    %c0_i32 = arith.constant 0 : i32
    %c0_i32_0 = arith.constant 0 : i32
    %c0_i32_1 = arith.constant 0 : i32
    return %c0_i32, %c0_i32_0 : i32, i32
  }
  func.func @transform_5(%arg0: i32) -> (i32, i32) {
    %c0_i32 = arith.constant 0 : i32
    %c0_i32_0 = arith.constant 0 : i32
    %c0_i32_1 = arith.constant 0 : i32
    return %c0_i32, %c0_i32_0 : i32, i32
  }
  func.func @transform_6(%arg0: i32) -> (i32, i32) {
    %c0_i32 = arith.constant 0 : i32
    %c0_i32_0 = arith.constant 0 : i32
    %c0_i32_1 = arith.constant 0 : i32
    return %c0_i32, %c0_i32_0 : i32, i32
  }
  func.func @transform_7(%arg0: i32) -> (i32, i32, i32) {
    %c0_i32 = arith.constant 0 : i32
    %c0_i32_0 = arith.constant 0 : i32
    %c0_i32_1 = arith.constant 0 : i32
    return %arg0, %c0_i32, %c0_i32_0 : i32, i32, i32
  }
}

module attributes {stable_mosaic.version = 11 : i64} {
  func.func @_mlp_kernel(%arg0: i32, %arg1: memref<128x256xf32, #tpu.memory_space<vmem>>, %arg2: memref<256x256xbf16, #tpu.memory_space<vmem>>, %arg3: memref<1x256xf32, #tpu.memory_space<vmem>>, %arg4: memref<256x128xbf16, #tpu.memory_space<vmem>>, %arg5: memref<1x128xf32, #tpu.memory_space<vmem>>, %arg6: memref<8x128xf32, #tpu.memory_space<vmem>>, %arg7: memref<1x1xf32, #tpu.memory_space<vmem>>, %arg8: memref<1x1x128xf32, #tpu.memory_space<vmem>>) attributes {dimension_semantics = [#tpu.dimension_semantics<parallel>], iteration_bounds = array<i64: 2>, scalar_prefetch = 0 : i64, scratch_operands = 0 : i64, tpu.core_type = #tpu.core_type<tc>, window_params = [{transform_indices = @transform_0, window_bounds = array<i64: 128, 256>}, {pipeline_mode = #tpu.pipeline_mode<synchronous>, transform_indices = @transform_1, window_bounds = array<i64: 256, 256>}, {pipeline_mode = #tpu.pipeline_mode<synchronous>, transform_indices = @transform_2, window_bounds = array<i64: 1, 256>}, {pipeline_mode = #tpu.pipeline_mode<synchronous>, transform_indices = @transform_3, window_bounds = array<i64: 256, 128>}, {pipeline_mode = #tpu.pipeline_mode<synchronous>, transform_indices = @transform_4, window_bounds = array<i64: 1, 128>}, {pipeline_mode = #tpu.pipeline_mode<synchronous>, transform_indices = @transform_5, window_bounds = array<i64: 8, 128>}, {pipeline_mode = #tpu.pipeline_mode<synchronous>, transform_indices = @transform_6, window_bounds = array<i64: 1, 1>}, {transform_indices = @transform_7, window_bounds = array<i64: 1, 1, 128>}]} {
    %c0 = arith.constant 0 : index
    %c0_0 = arith.constant 0 : index
    %0 = vector.load %arg1[%c0, %c0_0] : memref<128x256xf32, #tpu.memory_space<vmem>>, vector<128x256xf32>
    %1 = arith.truncf %0 : vector<128x256xf32> to vector<128x256xbf16>
    %c0_1 = arith.constant 0 : index
    %c0_2 = arith.constant 0 : index
    %2 = vector.load %arg2[%c0_1, %c0_2] : memref<256x256xbf16, #tpu.memory_space<vmem>>, vector<256x256xbf16>
    %cst = arith.constant dense<0.000000e+00> : vector<128x256xf32>
    %3 = tpu.matmul %1, %2, %cst {dimension_numbers = #tpu.dot_dimension_numbers<[1], [0], [0], [1], [0, 0, 1, 1], [], []>} : vector<128x256xbf16>, vector<256x256xbf16>, vector<128x256xf32> -> vector<128x256xf32>
    %c0_3 = arith.constant 0 : index
    %c0_4 = arith.constant 0 : index
    %4 = vector.load %arg3[%c0_3, %c0_4] : memref<1x256xf32, #tpu.memory_space<vmem>>, vector<1x256xf32>
    %5 = vector.broadcast %4 : vector<1x256xf32> to vector<128x256xf32>
    %6 = arith.addf %3, %5 : vector<128x256xf32>
    %cst_5 = arith.constant 0.000000e+00 : f32
    %7 = vector.broadcast %cst_5 : f32 to vector<128x256xf32>
    %8 = arith.maximumf %6, %7 : vector<128x256xf32>
    %9 = arith.truncf %8 : vector<128x256xf32> to vector<128x256xbf16>
    %c0_6 = arith.constant 0 : index
    %c0_7 = arith.constant 0 : index
    %10 = vector.load %arg4[%c0_6, %c0_7] : memref<256x128xbf16, #tpu.memory_space<vmem>>, vector<256x128xbf16>
    %cst_8 = arith.constant dense<0.000000e+00> : vector<128x128xf32>
    %11 = tpu.matmul %9, %10, %cst_8 {dimension_numbers = #tpu.dot_dimension_numbers<[1], [0], [0], [1], [0, 0, 1, 1], [], []>} : vector<128x256xbf16>, vector<256x128xbf16>, vector<128x128xf32> -> vector<128x128xf32>
    %c0_9 = arith.constant 0 : index
    %c0_10 = arith.constant 0 : index
    %12 = vector.load %arg5[%c0_9, %c0_10] : memref<1x128xf32, #tpu.memory_space<vmem>>, vector<1x128xf32>
    %13 = vector.broadcast %12 : vector<1x128xf32> to vector<128x128xf32>
    %14 = arith.addf %11, %13 : vector<128x128xf32>
    %cst_11 = arith.constant 0.000000e+00 : f32
    %15 = vector.broadcast %cst_11 : f32 to vector<128x128xf32>
    %16 = arith.maximumf %14, %15 : vector<128x128xf32>
    %c0_12 = arith.constant 0 : index
    %c0_13 = arith.constant 0 : index
    %17 = vector.load %arg6[%c0_12, %c0_13] : memref<8x128xf32, #tpu.memory_space<vmem>>, vector<8x128xf32>
    %cst_14 = arith.constant dense<0.000000e+00> : vector<8x128xf32>
    %18 = tpu.matmul %17, %16, %cst_14 {dimension_numbers = #tpu.dot_dimension_numbers<[1], [1], [0], [0], [0, 0, 1, 0], [], []>} : vector<8x128xf32>, vector<128x128xf32>, vector<8x128xf32> -> vector<8x128xf32>
    %19 = vector.extract_strided_slice %18 {offsets = [0, 0], sizes = [1, 128], strides = [1, 1]} : vector<8x128xf32> to vector<1x128xf32>
    %c0_15 = arith.constant 0 : index
    %c0_16 = arith.constant 0 : index
    %20 = vector.load %arg7[%c0_15, %c0_16] : memref<1x1xf32, #tpu.memory_space<vmem>>, vector<1x1xf32>
    %21 = vector.broadcast %20 : vector<1x1xf32> to vector<1x128xf32>
    %22 = arith.addf %19, %21 : vector<1x128xf32>
    %c0_17 = arith.constant 0 : index
    %c0_18 = arith.constant 0 : index
    %c0_19 = arith.constant 0 : index
    %23 = vector.load %arg8[%c0_17, %c0_18, %c0_19] : memref<1x1x128xf32, #tpu.memory_space<vmem>>, vector<1x1x128xf32>
    %24 = vector.shape_cast %23 : vector<1x1x128xf32> to vector<1x128xf32>
    %25 = vector.shape_cast %22 : vector<1x128xf32> to vector<1x1x128xf32>
    tpu.vector_store %arg8[%c0_17, %c0_18, %c0_19], %25 {strides = array<i32>} : memref<1x1x128xf32, #tpu.memory_space<vmem>>, vector<1x1x128xf32>,
    return
  }
  func.func @transform_0(%arg0: i32) -> (i32, i32) {
    %c0_i32 = arith.constant 0 : i32
    %c0_i32_0 = arith.constant 0 : i32
    return %arg0, %c0_i32 : i32, i32
  }
  func.func @transform_1(%arg0: i32) -> (i32, i32) {
    %c0_i32 = arith.constant 0 : i32
    %c0_i32_0 = arith.constant 0 : i32
    %c0_i32_1 = arith.constant 0 : i32
    return %c0_i32, %c0_i32_0 : i32, i32
  }
  func.func @transform_2(%arg0: i32) -> (i32, i32) {
    %c0_i32 = arith.constant 0 : i32
    %c0_i32_0 = arith.constant 0 : i32
    %c0_i32_1 = arith.constant 0 : i32
    return %c0_i32, %c0_i32_0 : i32, i32
  }
  func.func @transform_3(%arg0: i32) -> (i32, i32) {
    %c0_i32 = arith.constant 0 : i32
    %c0_i32_0 = arith.constant 0 : i32
    %c0_i32_1 = arith.constant 0 : i32
    return %c0_i32, %c0_i32_0 : i32, i32
  }
  func.func @transform_4(%arg0: i32) -> (i32, i32) {
    %c0_i32 = arith.constant 0 : i32
    %c0_i32_0 = arith.constant 0 : i32
    %c0_i32_1 = arith.constant 0 : i32
    return %c0_i32, %c0_i32_0 : i32, i32
  }
  func.func @transform_5(%arg0: i32) -> (i32, i32) {
    %c0_i32 = arith.constant 0 : i32
    %c0_i32_0 = arith.constant 0 : i32
    %c0_i32_1 = arith.constant 0 : i32
    return %c0_i32, %c0_i32_0 : i32, i32
  }
  func.func @transform_6(%arg0: i32) -> (i32, i32) {
    %c0_i32 = arith.constant 0 : i32
    %c0_i32_0 = arith.constant 0 : i32
    %c0_i32_1 = arith.constant 0 : i32
    return %c0_i32, %c0_i32_0 : i32, i32
  }
  func.func @transform_7(%arg0: i32) -> (i32, i32, i32) {
    %c0_i32 = arith.constant 0 : i32
    %c0_i32_0 = arith.constant 0 : i32
    %c0_i32_1 = arith.constant 0 : i32
    return %arg0, %c0_i32, %c0_i32_0 : i32, i32, i32
  }
}

</mosaic_0001>

<bundles_post_ra>
// kernel: clip_regressor_forward.1
= control target key start
LH: loop header
LB: loop body
LE: loop exit
PB: predicated region body
PF: predicated region fallthrough
CT: control target
= control target key end

     0   :  { %s2082_s0 = inlined_call_operand.hbm [shape: f32[256,256], index: 0, kind: input, shape index: {}]   ;;  %s2083_s1 = inlined_call_operand.hbm [shape: bf16[256,256], index: 1, kind: input, shape index: {}]   ;;  %s2084_s2 = inlined_call_operand.vmem [shape: f32[1,256], index: 2, kind: input, shape index: {}]   ;;  %s2085_s3 = inlined_call_operand.hbm [shape: bf16[256,128], index: 3, kind: input, shape index: {}]   ;;  %s2086_s4 = inlined_call_operand.vmem [shape: f32[1,128], index: 4, kind: input, shape index: {}]   ;;  %s2087_s5 = inlined_call_operand.vmem [shape: f32[8,128], index: 5, kind: input, shape index: {}]   ;;  %s2088_s6 = inlined_call_operand.<no memory space> [shape: f32[1,1], index: 6, kind: input, shape index: {}]   ;;  %s2089_s7 = inlined_call_operand.hbm [shape: f32[2,1,128], index: 7, kind: output, shape index: {}]  }
   0x1   :  { %v12_v0 = vstv %s2088_s6 }
   0x2   :  { %13 = vst [vmem:[#allocation2] sm:$0x1] %v12_v0 }
   0x3   :  { %14 = vsyncpa [#allocation4], 0 }
   0x4   :  { %16 = vsyncpa [#allocation4 + $0x1], 0 }
   0x5   :  { %17 = vsyncpa [#allocation7], 0 }
   0x6   :  { %18 = vsyncpa [#allocation5], 0 }
   0x7   :  { %20 = vsyncpa [#allocation5 + $0x1], 0  ;;  %s1736_s26 = smov 0   ;;  %s1738_s27 = smov 0  }
   0x8   :  { %s1740_s28 = smov 0   ;;  %s1742_s29 = smov 0  }
   0x9 LB: > { %s1757_s6 = sadd.s32 4294967295, %s1677_s29   ;;  %s1172_s30 = sadd.s32 4294967294, %s1677_s29   ;;  %s1677_s29 = sphi %s1742_s29, %s2109_s29   ;;  %s1673_s28 = sphi %s1740_s28, %s2108_s28   ;;  %s1669_s27 = sphi %s1738_s27, %s2107_s27   ;;  %s1665_s26 = sphi %s1736_s26, %s2106_s26  }
   0xa   : > { %p46_p0 = scmp.ne.s32.totalorder %s1669_s27, %s1665_s26  ;;  %p2090_p1 = scmp.eq.s32.totalorder %s1757_s6, 0 }
   0xb   : > { %p202_p3 = scmp.eq.s32.totalorder %s1172_s30, 1  ;;  %p1173_p5 = scmp.ge.s32.totalorder %s1677_s29, 1 }
   0xc   : > { %p1766_p4 = por %p2090_p1, %p46_p0  ;;  %p209_p7 = scmp.lt.s32.totalorder %s1677_s29, 3 }
   0xd   : > { %p1771_p6 = por %p202_p3, %p46_p0  ;;  %s1679_s11 = smov [#allocation6]  }
   0xe   : > { %s2093_s8 = scalar_select %p1766_p4, 1, 0 }
   0xf   : > { %s2094_s9 = scalar_select %p1771_p6, 1, 0 }
  0x10   : > { %p1776_p8 = pnand %p1173_p5, %p209_p7  ;;  %s221_s12 = sshll.u32 %s1679_s11, 4  ;;  %s1780_s12 = int_to_ptr.vmem [resolvable:$true] %s221_s12 }
  0x11   : > { %s1680_s14 = smov [#allocation8]   ;;  %s1521_s18 = scalar_lea.hbm %s2083_s1, 4096 }
  0x12   : > { %p1391_p9 = pneg %p1776_p8  ;;  %s237_s15 = sshll.u32 %s1680_s14, 4  ;;  %s1791_s15 = int_to_ptr.vmem [resolvable:$true] %s237_s15 }
  0x13   : > { %p1522_p12 = scmp.ne.s32.totalorder %s2083_s1, %s1521_s18  ;;  %p1528_p5 = scmp.lt.u32.totalorder %s1521_s18, %s2083_s1 }
  0x14   : > { %p1787_p11 = pnand %p1391_p9, %p2090_p1 }
  0x16   : > { %p1523_p13 = pneg %p1787_p11 }
  0x18   : > { %p1524_p0 = pnand %p1523_p13, %p1522_p12 }
  0x1a   : > { %p1525_p3 = pneg %p1524_p0 }
  0x1c   : > { %p1530_p7 = pnand %p1528_p5, %p1525_p3 }
  0x1e   : > { %1533 = shalt.err (!%p1530_p7)
}
  0x1f   : > { %s1534_s23 = scalar_lea.vmem %s1780_s12, 4096  ;;  %p1542_p2 = scmp.lt.s32.totalorder %s1780_s12, %s1780_s12 }
  0x20   : > { %p1535_p9 = scmp.ne.s32.totalorder %s1780_s12, %s1534_s23  ;;  %p1543_p12 = scmp.lt.s32.totalorder %s1534_s23, %s1534_s23 }
  0x22   : > { %p1537_p10 = pnand %p1535_p9, %p1523_p13  ;;  %p1544_p0 = por %p1543_p12, %p1542_p2 }
  0x24   : > { %p1538_p1 = pneg %p1537_p10 }
  0x26   : > { %p1545_p6 = pnand %p1544_p0, %p1538_p1 }
  0x28   : > { %1548 = shalt.err (!%p1545_p6)
}
  0x29   : > { %s1681_s24 = smov 128   ;;  %s1682_s25 = smov 8  }
  0x2a   : > { %1394 = dma.hbm_to_vmem [thread:$0]  (!%p1787_p11), %s2083_s1, 4096, %s1780_s12, [#allocation7], %s1681_s24, %s1681_s24, %s1682_s25  }
  0x2b   : > { %s1549_s17 = scalar_lea.hbm %s2085_s3, 2048 }
  0x2c   : > { %p1550_p2 = scmp.ne.s32.totalorder %s2085_s3, %s1549_s17  ;;  %p1556_p10 = scmp.lt.u32.totalorder %s1549_s17, %s2085_s3 }
  0x2e   : > { %p1552_p1 = pnand %p1550_p2, %p1523_p13 }
  0x30   : > { %p1553_p6 = pneg %p1552_p1 }
  0x32   : > { %p1558_p3 = pnand %p1556_p10, %p1553_p6 }
  0x34   : > { %1561 = shalt.err (!%p1558_p3)
}
  0x35   : > { %s1562_s12 = scalar_lea.vmem %s1791_s15, 2048  ;;  %p1570_p12 = scmp.lt.s32.totalorder %s1791_s15, %s1791_s15 }
  0x36   : > { %p1563_p5 = scmp.ne.s32.totalorder %s1791_s15, %s1562_s12  ;;  %p1571_p0 = scmp.lt.s32.totalorder %s1562_s12, %s1562_s12 }
  0x38   : > { %p1565_p7 = pnand %p1563_p5, %p1523_p13  ;;  %p1572_p2 = por %p1571_p0, %p1570_p12 }
  0x3a   : > { %p1566_p9 = pneg %p1565_p7 }
  0x3c   : > { %p1573_p1 = pnand %p1572_p2, %p1566_p9 }
  0x3e   : > { %1576 = shalt.err (!%p1573_p1)
}
  0x3f   : > { %s1683_s22 = smov 64   ;;  %s1684_s23 = smov 4  }
  0x40   : > { %1397 = dma.hbm_to_vmem [thread:$0]  (!%p1787_p11), %s2085_s3, 2048, %s1791_s15, [#allocation7], %s1683_s22, %s1683_s22, %s1684_s23  }
  0x41   : > { %s1846_s30 = sadd.s32 1, %s1677_s29   ;;  %s33_s14 = sadd.s32 1, %s1673_s28 }
  0x42   : > { %s30_s11 = ssub.s32 %s1677_s29, %s1846_s30  ;;  %p40_p6 = scmp.ne.s32.totalorder %s1673_s28, %s1669_s27 }
  0x43   : > { %p31_p13 = scmp.eq.s32.totalorder %s30_s11, 0  ;;  %p41_p10 = scmp.eq.s32.totalorder %s1677_s29, 0 }
  0x44   : > { %p2097_p5 = scmp.eq.s32.totalorder %s1757_s6, 1  ;;  %p1408_p9 = scmp.lt.s32.totalorder %s1677_s29, 2 }
  0x45   : > { %s1855_s16 = scalar_select %p31_p13, %s1673_s28, %s33_s14  }
  0x46   : > { %p42_p3 = por %p41_p10, %p40_p6  ;;  %p1859_p7 = por %p2097_p5, %p40_p6 }
  0x47   : > { %s260_s13 = sand.u32 1, %s1673_s28   ;;  %s1238_s15 = sshll.u32 %s1677_s29, 12 }
  0x48   : > { %s2098_s17 = scalar_select %p1859_p7, 1, 0 }
  0x49   : > { %s1177_s18 = sshll.u32 %s260_s13, 8  ;;  %s1869_s21 = scalar_lea.hbm %s2082_s0, %s1238_s15 }
  0x4a   : > { %s264_s12 = scalar_lea.vmem [#allocation3], %s1177_s18  ;;  %p1873_p11 = pnand %p1408_p9, %p42_p3 }
  0x4b   : > { %s272_s22 = sshll.u32 %s264_s12, 4  ;;  %s1877_s24 = scalar_lea.sflag [#allocation4], %s260_s13  ;;  %s1871_s22 = int_to_ptr.vmem [resolvable:$true] %s272_s22 }
  0x4c   : > { %s1577_s25 = scalar_lea.hbm %s1869_s21, 4096  ;;  %p1579_p0 = pneg %p1873_p11 }
  0x4d   : > { %p1578_p12 = scmp.ne.s32.totalorder %s1869_s21, %s1577_s25  ;;  %s1582_s18 = scalar_lea.hbm %s2082_s0, 8192 }
  0x4e   : > { %p1583_p13 = scmp.lt.u32.totalorder %s1869_s21, %s2082_s0  ;;  %p1584_p6 = scmp.lt.u32.totalorder %s1582_s18, %s1577_s25 }
  0x4f   : > { %p1580_p2 = pnand %p1579_p0, %p1578_p12  ;;  %p1586_p3 = scmp.lt.u32.totalorder %s1577_s25, %s1869_s21 }
  0x50   : > { %p1585_p10 = por %p1584_p6, %p1583_p13 }
  0x51   : > { %p1581_p1 = pneg %p1580_p2 }
  0x52   : > { %p1587_p5 = por %p1586_p3, %p1585_p10 }
  0x54   : > { %p1588_p9 = pnand %p1587_p5, %p1581_p1 }
  0x56   : > { %1591 = shalt.err (!%p1588_p9)
}
  0x57   : > { %s1592_s13 = scalar_lea.vmem %s1871_s22, 4096  ;;  %s1685_s20 = smov [#allocation3]  }
  0x58   : > { %p1593_p12 = scmp.ne.s32.totalorder %s1871_s22, %s1592_s13  ;;  %s1597_s12 = sshll.u32 %s1685_s20, 4  ;;  %s1598_s12 = int_to_ptr.vmem [resolvable:$false] %s1597_s12 }
  0x59   : > { %s1599_s11 = scalar_lea.vmem %s1598_s12, 8192  ;;  %p1600_p4 = scmp.lt.s32.totalorder %s1871_s22, %s1598_s12 }
  0x5a   : > { %p1595_p2 = pnand %p1593_p12, %p1579_p0  ;;  %p1601_p13 = scmp.lt.s32.totalorder %s1599_s11, %s1592_s13 }
  0x5c   : > { %p1596_p7 = pneg %p1595_p2  ;;  %p1602_p6 = por %p1601_p13, %p1600_p4 }
  0x5e   : > { %p1603_p10 = pnand %p1602_p6, %p1596_p7 }
  0x60   : > { %1606 = shalt.err (!%p1603_p10)
}
  0x61   : > { %s1686_s25 = smov 256   ;;  %s1687_s14 = smov 16  }
  0x62   : > { %1401 = dma.hbm_to_vmem [thread:$0]  (!%p1873_p11), %s1869_s21, 4096, %s1871_s22, %s1877_s24, %s1686_s25, %s1686_s25, %s1687_s14  }
  0x63   : > { %284 = sbr.rel (%p1776_p8) target bundleno = 911 (0x38f), region = 48  ;;  %s1908_s18 = sand.u32 (!%p1776_p8), 1, %s1669_s27  }
  0x64   : > { %s1182_s15 = sshll.u32 (!%p1776_p8), %s1908_s18, 8  ;;  %s287_s19 = scalar_lea.sflag (!%p1776_p8), [#allocation4], %s1908_s18 }
  0x65   : > { %s1912_s13 = scalar_lea.vmem (!%p1776_p8), [#allocation3], %s1182_s15  ;;  %p2100_p4 = scmp.ne.s32.totalorder (!%p1776_p8), %s2093_s8, 0 }
  0x6a   : > { %1652 = dma.done.wait (%p2100_p4), %s287_s19, 4096  }
  0x6b   : > { %1654 = vsyncadd (%p2100_p4), %s287_s19, 4294963200  ;;  %p2101_p7 = scmp.eq.s32.totalorder %s1757_s6, 0 }
  0x6d   : > { %1656 = dma.done.wait (%p2101_p7), [#allocation7], 6144   ;;  %p2102_p8 = pmov %p2101_p7 }
  0x6e   : > { %v1457_v1 = vld [vmem:[#allocation6 + $0x4] ss:$8 sps:$4 sm:$0xff]   ;;  %v1459_v2 = vld [vmem:[#allocation6] ss:$8 sps:$4 sm:$0xff]   ;;  %v1460_v3 = vld [vmem:[#allocation6 + $0x14] ss:$8 sps:$4 sm:$0xff]  }
  0x6f   : > { %1658 = vsyncadd (%p2102_p8), [#allocation7], 4294961152  ;;  %582 = vmatprep.subr.bf16.mxu0 %v1457_v1  ;;  %v1462_v4 = vld [vmem:[#allocation6 + $0x10] ss:$8 sps:$4 sm:$0xff]   ;;  %v1463_v5 = vld [vmem:[#allocation6 + $0x24] ss:$8 sps:$4 sm:$0xff]  }
  0x70   : > { %583 = vmatpush1.bf16.msra.mxu0 %v1459_v2  ;;  %v1465_v6 = vld [vmem:[#allocation6 + $0x20] ss:$8 sps:$4 sm:$0xff]   ;;  %v1466_v7 = vld [vmem:[#allocation6 + $0x34] ss:$8 sps:$4 sm:$0xff]   ;;  %v1468_v8 = vld [vmem:[#allocation6 + $0x30] ss:$8 sps:$4 sm:$0xff]  }
  0x71   : > { %584 = vmatprep.subr.bf16.mxu0 %v1460_v3  ;;  %v1469_v9 = vld [vmem:[#allocation6 + $0x44] ss:$8 sps:$4 sm:$0xff]   ;;  %v1471_v10 = vld [vmem:[#allocation6 + $0x40] ss:$8 sps:$4 sm:$0xff]   ;;  %v1472_v11 = vld [vmem:[#allocation6 + $0x54] ss:$8 sps:$4 sm:$0xff]  }
  0x72   : > { %v1474_v12 = vld [vmem:[#allocation6 + $0x50] ss:$8 sps:$4 sm:$0xff]   ;;  %v1475_v13 = vld [vmem:[#allocation6 + $0x64] ss:$8 sps:$4 sm:$0xff]   ;;  %v1477_v17 = vld [vmem:[#allocation6 + $0x60] ss:$8 sps:$4 sm:$0xff]  }
  0x73   : > { %v331_v14 = vld [vmem:[%s1912_s13 + $0x8] sm:$0xff]  ;;  %v333_v15 = vld [vmem:[%s1912_s13 + $0x18] sm:$0xff]  ;;  %v1505_v23 = vld [vmem:[#allocation8 + $0x40] sm:$0xff]   ;;  %vm1689_vm0 = vmmov 0   ;;  %s1234_s20 = sshll.u32 %s1757_s6, 4  ;;  %s327_s12 = scalar_lea.vmem [#allocation9], %s1908_s18 }
  0x74   : > { %585 = vmatpush1.bf16.msra.mxu0 %v1462_v4  ;;  %v363_v16 = vpack.c.bf16 %v333_v15, %v331_v14  ;;  %v1478_v18 = vld [vmem:[#allocation6 + $0x74] ss:$8 sps:$4 sm:$0xff]   ;;  %v1480_v19 = vld [vmem:[#allocation6 + $0x70] ss:$8 sps:$4 sm:$0xff]   ;;  %v1481_v20 = vld [vmem:[#allocation6 + $0x84] ss:$8 sps:$4 sm:$0xff]   ;;  %1239 = vmatprep.subr.bf16.mxu1 %v1505_v23  ;;  %s2038_s15 = scalar_lea.hbm %s2089_s7, %s1234_s20 }
  0x75   : > { %586 = vmatprep.subr.bf16.mxu0 %v1463_v5  ;;  %v1483_v21 = vld [vmem:[#allocation6 + $0x80] ss:$8 sps:$4 sm:$0xff]   ;;  %v1484_v22 = vld [vmem:[#allocation6 + $0x94] ss:$8 sps:$4 sm:$0xff]   ;;  %v1486_v24 = vld [vmem:[#allocation6 + $0x90] ss:$8 sps:$4 sm:$0xff]  }
  0x76   : > { %614 = vmatprep.mubr.bf16.mxu0 %v363_v16  ;;  %v1506_v25 = vld [vmem:[#allocation8] sm:$0xff]   ;;  %v1507_v27 = vld [vmem:[#allocation8 + $0x48] sm:$0xff]   ;;  %v1509_v29 = vld [vmem:[#allocation8 + $0x50] sm:$0xff]   ;;  %s1087_s11 = sshll.u32 %s327_s12, 4  ;;  %s1075_s19 = scalar_lea.sflag [#allocation5], %s1908_s18  ;;  %s2040_s11 = int_to_ptr.vmem [resolvable:$true] %s1087_s11 }
  0x77   : > { %v1487_v26 = vld [vmem:[#allocation6 + $0xa4] ss:$8 sps:$4 sm:$0xff]   ;;  %1240 = vmatpush3.bf16.msra.mxu1 %v1506_v25  ;;  %v1489_v30 = vld [vmem:[#allocation6 + $0xa0] ss:$8 sps:$4 sm:$0xff]   ;;  %v1490_v31 = vld [vmem:[#allocation6 + $0xb4] ss:$8 sps:$4 sm:$0xff]  }
  0x78   : > { %587 = vmatpush1.bf16.msra.mxu0 %v1465_v6  ;;  %v1508_v28 = vld [vmem:[#allocation8 + $0x8] sm:$0xff]   ;;  %1241 = vmatprep.subr.bf16.mxu1 %v1507_v27  ;;  %v1510_v32 = vld [vmem:[#allocation8 + $0x10] sm:$0xff]   ;;  %v1511_v33 = vld [vmem:[#allocation8 + $0x58] sm:$0xff]   ;;  %p2103_p0 = scmp.ne.s32.totalorder %s2098_s17, 0  ;;  %s1692_s6 = smov [#allocation9]  }
  0x79   : > { %588 = vmatprep.subr.bf16.mxu0 %v1466_v7  ;;  %v1492_v34 = vld [vmem:[#allocation6 + $0xb0] ss:$8 sps:$4 sm:$0xff]   ;;  %v1493_v35 = vld [vmem:[#allocation6 + $0xc4] ss:$8 sps:$4 sm:$0xff]   ;;  %v1495_v38 = vld [vmem:[#allocation6 + $0xc0] ss:$8 sps:$4 sm:$0xff]  }
  0x7a   : > { %v1512_v36 = vld [vmem:[#allocation8 + $0x18] sm:$0xff]   ;;  %v1513_v37 = vld [vmem:[#allocation8 + $0x60] sm:$0xff]   ;;  %v1515_v41 = vld [vmem:[#allocation8 + $0x68] sm:$0xff]   ;;  %s1611_s8 = sshll.u32 %s1692_s6, 4  ;;  %s1612_s8 = int_to_ptr.vmem [resolvable:$false] %s1611_s8 }
  0x7b   : > { %1242 = vmatpush3.bf16.msra.mxu1 %v1508_v28  ;;  %v1514_v39 = vld [vmem:[#allocation8 + $0x20] sm:$0xff]   ;;  %v1496_v40 = vld [vmem:[#allocation6 + $0xd4] ss:$8 sps:$4 sm:$0xff]   ;;  %v1498_v42 = vld [vmem:[#allocation6 + $0xd0] ss:$8 sps:$4 sm:$0xff]   ;;  %s1613_s10 = scalar_lea.vmem %s1612_s8, 32  ;;  %p1614_p5 = scmp.lt.s32.totalorder %s2040_s11, %s1612_s8 }
  0x7c   : > { %589 = vmatpush1.bf16.msra.mxu0 %v1468_v8  ;;  %1243 = vmatprep.subr.bf16.mxu1 %v1509_v29  ;;  %v1499_v43 = vld [vmem:[#allocation6 + $0xe4] ss:$8 sps:$4 sm:$0xff]   ;;  %v1501_v44 = vld [vmem:[#allocation6 + $0xe0] ss:$8 sps:$4 sm:$0xff]   ;;  %v1502_v45 = vld [vmem:[#allocation6 + $0xf4] ss:$8 sps:$4 sm:$0xff]  }
  0x7d   : > { %590 = vmatprep.subr.bf16.mxu0 %v1469_v9  ;;  %v1504_v46 = vld [vmem:[#allocation6 + $0xf0] ss:$8 sps:$4 sm:$0xff]   ;;  %v330_v47 = vld [vmem:[%s1912_s13] sm:$0xff]  ;;  %v335_v49 = vld [vmem:[%s1912_s13 + $0x28] sm:$0xff] }
  0x7e   : > { %v332_v48 = vld [vmem:[%s1912_s13 + $0x10] sm:$0xff]  ;;  %v337_v50 = vld [vmem:[%s1912_s13 + $0x38] sm:$0xff]  ;;  %v334_v53 = vld [vmem:[%s1912_s13 + $0x20] sm:$0xff] }
  0x7f   : > { %1244 = vmatpush3.bf16.msra.mxu1 %v1510_v32  ;;  %v362_v51 = vpack.c.bf16 %v332_v48, %v330_v47  ;;  %v365_v52 = vpack.c.bf16 %v337_v50, %v335_v49  ;;  %v336_v54 = vld [vmem:[%s1912_s13 + $0x30] sm:$0xff]  ;;  %v339_v55 = vld [vmem:[%s1912_s13 + $0x48] sm:$0xff]  ;;  %v341_v56 = vld [vmem:[%s1912_s13 + $0x58] sm:$0xff] }
  0x80   : > { %591 = vmatpush1.bf16.msra.mxu0 %v1471_v10  ;;  %1245 = vmatprep.subr.bf16.mxu1 %v1511_v33  ;;  %v364_v57 = vpack.c.bf16 %v336_v54, %v334_v53  ;;  %v367_v58 = vpack.c.bf16 %v341_v56, %v339_v55  ;;  %v338_v59 = vld [vmem:[%s1912_s13 + $0x40] sm:$0xff]  ;;  %v340_v60 = vld [vmem:[%s1912_s13 + $0x50] sm:$0xff]  ;;  %v343_v61 = vld [vmem:[%s1912_s13 + $0x68] sm:$0xff]  ;;  %v412_v33 = vlaneseq }
  0x81   : > { %592 = vmatprep.subr.bf16.mxu0 %v1472_v11  ;;  %v345_v62 = vld [vmem:[%s1912_s13 + $0x78] sm:$0xff]  ;;  %v366_v63 = vpack.c.bf16 %v340_v60, %v338_v59  ;;  %v342_v1 = vld [vmem:[%s1912_s13 + $0x60] sm:$0xff]  ;;  %v344_v2 = vld [vmem:[%s1912_s13 + $0x70] sm:$0xff] }
  0x82   : > { %v369_v0 = vpack.c.bf16 %v345_v62, %v343_v61  ;;  %v347_v3 = vld [vmem:[%s1912_s13 + $0x88] sm:$0xff]  ;;  %v349_v4 = vld [vmem:[%s1912_s13 + $0x98] sm:$0xff]  ;;  %v368_v5 = vpack.c.bf16 %v344_v2, %v342_v1  ;;  %v346_v7 = vld [vmem:[%s1912_s13 + $0x80] sm:$0xff] }
  0x83   : > { %1246 = vmatpush3.bf16.msra.mxu1 %v1512_v36  ;;  %v371_v6 = vpack.c.bf16 %v349_v4, %v347_v3  ;;  %v348_v8 = vld [vmem:[%s1912_s13 + $0x90] sm:$0xff]  ;;  %v351_v9 = vld [vmem:[%s1912_s13 + $0xa8] sm:$0xff]  ;;  %v353_v10 = vld [vmem:[%s1912_s13 + $0xb8] sm:$0xff] }
  0x84   : > { %593 = vmatpush1.bf16.msra.mxu0 %v1474_v12  ;;  %1247 = vmatprep.subr.bf16.mxu1 %v1513_v37  ;;  %v370_v11 = vpack.c.bf16 %v348_v8, %v346_v7  ;;  %v373_v12 = vpack.c.bf16 %v353_v10, %v351_v9  ;;  %v352_v14 = vld [vmem:[%s1912_s13 + $0xb0] sm:$0xff]  ;;  %v355_v15 = vld [vmem:[%s1912_s13 + $0xc8] sm:$0xff]  ;;  %v357_v16 = vld [vmem:[%s1912_s13 + $0xd8] sm:$0xff] }
  0x85   : > { %594 = vmatprep.subr.bf16.mxu0 %v1475_v13  ;;  %v350_v13 = vld [vmem:[%s1912_s13 + $0xa0] sm:$0xff]  ;;  %v1516_v28 = vld [vmem:[#allocation8 + $0x28] sm:$0xff]   ;;  %v1517_v29 = vld [vmem:[#allocation8 + $0x70] sm:$0xff]  }
  0x86   : > { %v358_v25 = vld [vmem:[%s1912_s13 + $0xe0] sm:$0xff]  ;;  %v1520_v32 = vld [vmem:[#allocation8 + $0x38] sm:$0xff]  }
  0x87   : > { %1248 = vmatpush3.bf16.msra.mxu1 %v1514_v39  ;;  %v410_v36 = vld [vmem:[%s2084_s2] sm:$0x3] }
  0x88   : > { %595 = vmatpush1.bf16.msra.mxu0 %v1477_v17  ;;  %1249 = vmatprep.subr.bf16.mxu1 %v1515_v41  ;;  %v372_v17 = vpack.c.bf16 %v352_v14, %v350_v13 }
  0x89   : > { %596 = vmatprep.subr.bf16.mxu0 %v1478_v18  ;;  %v375_v18 = vpack.c.bf16 %v357_v16, %v355_v15 }
  0x8b   : > { %1250 = vmatpush3.bf16.msra.mxu1 %v1516_v28 }
  0x8c   : > { %597 = vmatpush1.bf16.msra.mxu0 %v1480_v19  ;;  %v354_v19 = vld [vmem:[%s1912_s13 + $0xc0] sm:$0xff]  ;;  %1251 = vmatprep.subr.bf16.mxu1 %v1517_v29 }
  0x8d   : > { %598 = vmatprep.subr.bf16.mxu0 %v1481_v20  ;;  %v356_v20 = vld [vmem:[%s1912_s13 + $0xd0] sm:$0xff] }
  0x8e   : > { %v374_v23 = vpack.c.bf16 %v356_v20, %v354_v19 }
  0x90   : > { %599 = vmatpush1.bf16.msra.mxu0 %v1483_v21  ;;  %v359_v21 = vld [vmem:[%s1912_s13 + $0xe8] sm:$0xff] }
  0x91   : > { %600 = vmatprep.subr.bf16.mxu0 %v1484_v22  ;;  %v361_v22 = vld [vmem:[%s1912_s13 + $0xf8] sm:$0xff] }
  0x94   : > { %601 = vmatpush1.bf16.msra.mxu0 %v1486_v24  ;;  %v377_v24 = vpack.c.bf16 %v361_v22, %v359_v21 }
  0x95   : > { %602 = vmatprep.subr.bf16.mxu0 %v1487_v26  ;;  %v360_v26 = vld [vmem:[%s1912_s13 + $0xf0] sm:$0xff]  ;;  %s1607_s13 = scalar_lea.vmem %s2040_s11, 16 }
  0x96   : > { %v376_v27 = vpack.c.bf16 %v360_v26, %v358_v25  ;;  %p1608_p11 = scmp.ne.s32.totalorder %s2040_s11, %s1607_s13  ;;  %p1615_p9 = scmp.lt.s32.totalorder %s1613_s10, %s1607_s13 }
  0x98   : > { %603 = vmatpush1.bf16.msra.mxu0 %v1489_v30  ;;  %v1518_v30 = vld [vmem:[#allocation8 + $0x30] sm:$0xff]   ;;  %p1609_p1 = pnand %p1608_p11, %p2103_p0  ;;  %p1616_p12 = por %p1615_p9, %p1614_p5 }
  0x99   : > { %604 = vmatprep.subr.bf16.mxu0 %v1490_v31  ;;  %1252 = vmatpush3.bf16.msra.mxu1 %v1518_v30  ;;  %v1519_v31 = vld [vmem:[#allocation8 + $0x78] sm:$0xff]  }
  0x9a   : > { %1253 = vmatprep.subr.bf16.mxu1 %v1519_v31  ;;  %p1610_p3 = pneg %p1609_p1 }
  0x9c   : > { %605 = vmatpush1.bf16.msra.mxu0 %v1492_v34  ;;  %v1954_v34 = vshrl.u32 %v412_v33, 7  ;;  %p1617_p2 = pnand %p1616_p12, %p1610_p3 }
  0x9d   : > { %606 = vmatprep.subr.bf16.mxu0 %v1493_v35  ;;  %1254 = vmatpush3.bf16.msra.mxu1 %v1520_v32 }
  0x9e   : > { %v414_v35 = vsub.s32 0, %v1954_v34  ;;  %v418_v37 = vsub.s32 1, %v1954_v34 }
  0xa0   : > { %607 = vmatpush1.bf16.msra.mxu0 %v1495_v38  ;;  %v1963_v38 = vrot.slane %v410_v36, %v414_v35  ;;  %v1965_v39 = vrot.slane %v410_v36, %v418_v37 }
  0xa1   : > { %608 = vmatprep.subr.bf16.mxu0 %v1496_v40 }
  0xa4   : > { %609 = vmatpush1.bf16.msra.mxu0 %v1498_v42 }
  0xa5   : > { %610 = vmatprep.subr.bf16.mxu0 %v1499_v43 }
  0xa8   : > { %611 = vmatpush1.bf16.msra.mxu0 %v1501_v44 }
  0xa9   : > { %612 = vmatprep.subr.bf16.mxu0 %v1502_v45 }
  0xac   : > { %613 = vmatpush1.bf16.msra.mxu0 %v1504_v46 }
  0xaf   : > { %615 = vmatmul.mubr.bf16.vlgmr.msra.gmra.mrb[0].mxu0 %v362_v51 }
  0xb0   : > { %624 = vmatprep.mubr.bf16.mxu0 %v365_v52 }
  0xb7   : > { %625 = vmatmul.mubr.bf16.gmra.mrb[4].mxu0 %v364_v57 }
  0xb8   : > { %634 = vmatprep.mubr.bf16.mxu0 %v367_v58 }
  0xbf   : > { %635 = vmatmul.mubr.bf16.gmra.mrb[8].mxu0 %v366_v63 }
  0xc0   : > { %644 = vmatprep.mubr.bf16.mxu0 %v369_v0 }
  0xc7   : > { %645 = vmatmul.mubr.bf16.gmra.mrb[12].mxu0 %v368_v5 }
  0xc8   : > { %654 = vmatprep.mubr.bf16.mxu0 %v371_v6 }
  0xcf   : > { %655 = vmatmul.mubr.bf16.gmra.mrb[16].mxu0 %v370_v11 }
  0xd0   : > { %664 = vmatprep.mubr.bf16.mxu0 %v373_v12 }
  0xd7   : > { %665 = vmatmul.mubr.bf16.gmra.mrb[20].mxu0 %v372_v17 }
  0xd8   : > { %674 = vmatprep.mubr.bf16.mxu0 %v375_v18 }
  0xdf   : > { %675 = vmatmul.mubr.bf16.gmra.mrb[24].mxu0 %v374_v23 }
  0xe0   : > { %684 = vmatprep.mubr.bf16.mxu0 %v377_v24 }
  0xe7   : > { %685 = vmatmul.mubr.bf16.gmra.mrb[28].mxu0 %v376_v27 }
 0x182   : > { %v616_v40 = vpop.f32.mrb[0].mxu0 }
 0x183   : > { %v617_v41 = vadd.f32 %v616_v40, %v1963_v38  ;;  %v618_v42 = vpop.f32.mrb[1].mxu0 }
 0x184   : > { %v619_v43 = vadd.f32 %v618_v42, %v1965_v39  ;;  %v620_v44 = vpop.f32.mrb[2].mxu0 }
 0x185   : > { %v621_v45 = vadd.f32 %v620_v44, %v1963_v38  ;;  %v622_v46 = vpop.f32.mrb[3].mxu0  ;;  %v695_v48 = vmax.f32 %v617_v41, 0.0 }
 0x186   : > { %v623_v47 = vadd.f32 %v622_v46, %v1965_v39  ;;  %v696_v50 = vmax.f32 %v619_v43, 0.0 }
 0x187   : > { %v697_v49 = vmax.f32 %v621_v45, 0.0 }
 0x188   : > { %v698_v51 = vmax.f32 %v623_v47, 0.0 }
 0x189   : > { %v727_v52 = vpack.c.bf16 %v697_v49, %v695_v48 }
 0x18a   : > { %v626_v53 = vpop.f32.mrb[4].mxu0  ;;  %v728_v54 = vpack.c.bf16 %v698_v51, %v696_v50 }
 0x18b   : > { %v627_v55 = vadd.f32 %v626_v53, %v1963_v38  ;;  %v628_v56 = vpop.f32.mrb[5].mxu0 }
 0x18c   : > { %v629_v57 = vadd.f32 %v628_v56, %v1965_v39  ;;  %v630_v58 = vpop.f32.mrb[6].mxu0  ;;  %910 = vmatprep.mubr.bf16.mxu1 %v728_v54 }
 0x18d   : > { %v631_v59 = vadd.f32 %v630_v58, %v1963_v38  ;;  %v632_v60 = vpop.f32.mrb[7].mxu0  ;;  %911 = vmatmul.mubr.bf16.vlgmr.msra.gmra.mrb[0].mxu1 %v727_v52  ;;  %v699_v62 = vmax.f32 %v627_v55, 0.0 }
 0x18e   : > { %v633_v61 = vadd.f32 %v632_v60, %v1965_v39  ;;  %v700_v0 = vmax.f32 %v629_v57, 0.0 }
 0x18f   : > { %v701_v63 = vmax.f32 %v631_v59, 0.0 }
 0x190   : > { %v702_v1 = vmax.f32 %v633_v61, 0.0 }
 0x191   : > { %v729_v2 = vpack.c.bf16 %v701_v63, %v699_v62 }
 0x192   : > { %v730_v3 = vpack.c.bf16 %v702_v1, %v700_v0  ;;  %v636_v4 = vpop.f32.mrb[8].mxu0 }
 0x193   : > { %v637_v5 = vadd.f32 %v636_v4, %v1963_v38  ;;  %v638_v6 = vpop.f32.mrb[9].mxu0 }
 0x194   : > { %v639_v7 = vadd.f32 %v638_v6, %v1965_v39  ;;  %v640_v8 = vpop.f32.mrb[10].mxu0  ;;  %918 = vmatprep.mubr.bf16.mxu1 %v730_v3 }
 0x195   : > { %v641_v9 = vadd.f32 %v640_v8, %v1963_v38  ;;  %v642_v10 = vpop.f32.mrb[11].mxu0  ;;  %919 = vmatmul.mubr.bf16.gmra.mrb[4].mxu1 %v729_v2  ;;  %v703_v12 = vmax.f32 %v637_v5, 0.0 }
 0x196   : > { %v643_v11 = vadd.f32 %v642_v10, %v1965_v39  ;;  %v704_v14 = vmax.f32 %v639_v7, 0.0 }
 0x197   : > { %v705_v13 = vmax.f32 %v641_v9, 0.0 }
 0x198   : > { %v706_v15 = vmax.f32 %v643_v11, 0.0 }
 0x199   : > { %v731_v16 = vpack.c.bf16 %v705_v13, %v703_v12 }
 0x19a   : > { %v732_v17 = vpack.c.bf16 %v706_v15, %v704_v14  ;;  %v646_v18 = vpop.f32.mrb[12].mxu0 }
 0x19b   : > { %v647_v19 = vadd.f32 %v646_v18, %v1963_v38  ;;  %v648_v20 = vpop.f32.mrb[13].mxu0 }
 0x19c   : > { %v649_v21 = vadd.f32 %v648_v20, %v1965_v39  ;;  %v650_v22 = vpop.f32.mrb[14].mxu0  ;;  %926 = vmatprep.mubr.bf16.mxu1 %v732_v17 }
 0x19d   : > { %v651_v23 = vadd.f32 %v650_v22, %v1963_v38  ;;  %v652_v24 = vpop.f32.mrb[15].mxu0  ;;  %927 = vmatmul.mubr.bf16.gmra.mrb[8].mxu1 %v731_v16  ;;  %v707_v26 = vmax.f32 %v647_v19, 0.0 }
 0x19e   : > { %v653_v25 = vadd.f32 %v652_v24, %v1965_v39  ;;  %v708_v28 = vmax.f32 %v649_v21, 0.0 }
 0x19f   : > { %v709_v27 = vmax.f32 %v651_v23, 0.0 }
 0x1a0   : > { %v710_v29 = vmax.f32 %v653_v25, 0.0 }
 0x1a1   : > { %v733_v30 = vpack.c.bf16 %v709_v27, %v707_v26 }
 0x1a2   : > { %v734_v31 = vpack.c.bf16 %v710_v29, %v708_v28  ;;  %v656_v32 = vpop.f32.mrb[16].mxu0  ;;  %v1688_v28 = vmov 0.0|0.0   ;;  %v1690_v29 = vmov 0.0  }
 0x1a3   : > { %v657_v33 = vadd.f32 %v656_v32, %v1963_v38  ;;  %v658_v36 = vpop.f32.mrb[17].mxu0  ;;  %1355 = vmatprep.subr.bf16.mxu1 %v1688_v28 }
 0x1a4   : > { %v659_v37 = vadd.f32 %v658_v36, %v1965_v39  ;;  %v660_v40 = vpop.f32.mrb[18].mxu0  ;;  %934 = vmatprep.mubr.bf16.mxu1 %v734_v31 }
 0x1a5   : > { %v661_v41 = vadd.f32 %v660_v40, %v1963_v38  ;;  %v662_v42 = vpop.f32.mrb[19].mxu0  ;;  %935 = vmatmul.mubr.bf16.gmra.mrb[12].mxu1 %v733_v30  ;;  %v711_v44 = vmax.f32 %v657_v33, 0.0  ;;  %v1062_v30 = vld [vmem:[#allocation2] sm:$0x1] }
 0x1a6   : > { %v663_v43 = vadd.f32 %v662_v42, %v1965_v39  ;;  %v712_v46 = vmax.f32 %v659_v37, 0.0 }
 0x1a7   : > { %v713_v45 = vmax.f32 %v661_v41, 0.0 }
 0x1a8   : > { %v714_v47 = vmax.f32 %v663_v43, 0.0 }
 0x1a9   : > { %v735_v48 = vpack.c.bf16 %v713_v45, %v711_v44 }
 0x1aa   : > { %v736_v49 = vpack.c.bf16 %v714_v47, %v712_v46  ;;  %v666_v50 = vpop.f32.mrb[20].mxu0 }
 0x1ab   : > { %v667_v51 = vadd.f32 %v666_v50, %v1963_v38  ;;  %v668_v52 = vpop.f32.mrb[21].mxu0 }
 0x1ac   : > { %v669_v53 = vadd.f32 %v668_v52, %v1965_v39  ;;  %v670_v54 = vpop.f32.mrb[22].mxu0  ;;  %942 = vmatprep.mubr.bf16.mxu1 %v736_v49 }
 0x1ad   : > { %v671_v55 = vadd.f32 %v670_v54, %v1963_v38  ;;  %v672_v56 = vpop.f32.mrb[23].mxu0  ;;  %943 = vmatmul.mubr.bf16.gmra.mrb[16].mxu1 %v735_v48  ;;  %v715_v58 = vmax.f32 %v667_v51, 0.0 }
 0x1ae   : > { %v673_v57 = vadd.f32 %v672_v56, %v1965_v39  ;;  %v716_v60 = vmax.f32 %v669_v53, 0.0 }
 0x1af   : > { %v717_v59 = vmax.f32 %v671_v55, 0.0 }
 0x1b0   : > { %v718_v61 = vmax.f32 %v673_v57, 0.0 }
 0x1b1   : > { %v737_v62 = vpack.c.bf16 %v717_v59, %v715_v58 }
 0x1b2   : > { %v738_v63 = vpack.c.bf16 %v718_v61, %v716_v60  ;;  %v676_v0 = vpop.f32.mrb[24].mxu0 }
 0x1b3   : > { %v677_v1 = vadd.f32 %v676_v0, %v1963_v38  ;;  %v678_v2 = vpop.f32.mrb[25].mxu0 }
 0x1b4   : > { %v679_v3 = vadd.f32 %v678_v2, %v1965_v39  ;;  %v680_v4 = vpop.f32.mrb[26].mxu0  ;;  %950 = vmatprep.mubr.bf16.mxu1 %v738_v63 }
 0x1b5   : > { %v681_v5 = vadd.f32 %v680_v4, %v1963_v38  ;;  %v682_v6 = vpop.f32.mrb[27].mxu0  ;;  %951 = vmatmul.mubr.bf16.gmra.mrb[20].mxu1 %v737_v62  ;;  %v719_v8 = vmax.f32 %v677_v1, 0.0 }
 0x1b6   : > { %v683_v7 = vadd.f32 %v682_v6, %v1965_v39  ;;  %v720_v10 = vmax.f32 %v679_v3, 0.0 }
 0x1b7   : > { %v721_v9 = vmax.f32 %v681_v5, 0.0 }
 0x1b8   : > { %v722_v11 = vmax.f32 %v683_v7, 0.0 }
 0x1b9   : > { %v739_v12 = vpack.c.bf16 %v721_v9, %v719_v8 }
 0x1ba   : > { %v740_v13 = vpack.c.bf16 %v722_v11, %v720_v10  ;;  %v686_v14 = vpop.f32.mrb[28].mxu0 }
 0x1bb   : > { %v687_v15 = vadd.f32 %v686_v14, %v1963_v38  ;;  %v688_v16 = vpop.f32.mrb[29].mxu0 }
 0x1bc   : > { %v689_v17 = vadd.f32 %v688_v16, %v1965_v39  ;;  %v690_v18 = vpop.f32.mrb[30].mxu0  ;;  %958 = vmatprep.mubr.bf16.mxu1 %v740_v13 }
 0x1bd   : > { %v691_v19 = vadd.f32 %v690_v18, %v1963_v38  ;;  %v692_v20 = vpop.f32.mrb[31].mxu0  ;;  %959 = vmatmul.mubr.bf16.gmra.mrb[24].mxu1 %v739_v12  ;;  %v723_v22 = vmax.f32 %v687_v15, 0.0  ;;  %v1691_v38 = vmov 0  }
 0x1be   : > { %v693_v21 = vadd.f32 %v692_v20, %v1965_v39  ;;  %v724_v24 = vmax.f32 %v689_v17, 0.0  ;;  %1456 = vset.pattern.permute.xlu0 %v1691_v38  ;;  %v2003_v39 = vld [vmem:[%s2086_s4] ss:$0 sm:$0xff] }
 0x1bf   : > { %v725_v23 = vmax.f32 %v691_v19, 0.0  ;;  %1065 = vperm.xlu0 %1456, %v1062_v30  }
 0x1c0   : > { %v726_v25 = vmax.f32 %v693_v21, 0.0 }
 0x1c1   : > { %v741_v26 = vpack.c.bf16 %v725_v23, %v723_v22 }
 0x1c2   : > { %v742_v27 = vpack.c.bf16 %v726_v25, %v724_v24 }
 0x1c4   : > { %966 = vmatprep.mubr.bf16.mxu1 %v742_v27 }
 0x1c5   : > { %967 = vmatmul.mubr.bf16.gmra.mrb[28].mxu1 %v741_v26 }
 0x1c6   : > { %1352 = vmatprep.mubr.msk.f32.mxu1 %vm1689_vm0, %v1690_v29 }
 0x260   : > { %v1255_v31 = vpop.f32.mrb[0].mxu1 }
 0x261   : > { %v1256_v32 = vpop.f32.mrb[1].mxu1 }
 0x262   : > { %v1257_v33 = vadd.f32 %v1256_v32, %v1255_v31  ;;  %v1258_v36 = vpop.f32.mrb[2].mxu1 }
 0x263   : > { %v1259_v37 = vpop.f32.mrb[3].mxu1 }
 0x264   : > { %v913_v40 = vadd.f32 %v1257_v33, %v2003_v39  ;;  %v1260_v41 = vadd.f32 %v1259_v37, %v1258_v36 }
 0x266   : > { %v916_v42 = vadd.f32 %v1260_v41, %v2003_v39  ;;  %v975_v43 = vmax.f32 %v913_v40, 0.0 }
 0x268   : > { %v976_v44 = vmax.f32 %v916_v42, 0.0  ;;  %v1261_v45 = vpop.f32.mrb[4].mxu1 }
 0x269   : > { %v1262_v46 = vpop.f32.mrb[5].mxu1 }
 0x26a   : > { %v1356_v47 = vpack.c.bf16 %v976_v44, %v975_v43  ;;  %v1263_v48 = vadd.f32 %v1262_v46, %v1261_v45  ;;  %v1264_v49 = vpop.f32.mrb[6].mxu1 }
 0x26b   : > { %v1265_v50 = vpop.f32.mrb[7].mxu1 }
 0x26c   : > { %v921_v51 = vadd.f32 %v1263_v48, %v2003_v39  ;;  %v1266_v52 = vadd.f32 %v1265_v50, %v1264_v49  ;;  %1357 = vmatpush3.bf16.xpose.msra.mxu1 %v1356_v47 }
 0x26d   : > { %1358 = vmatprep.subr.bf16.mxu1 %v1688_v28 }
 0x26e   : > { %v924_v53 = vadd.f32 %v1266_v52, %v2003_v39  ;;  %v977_v54 = vmax.f32 %v921_v51, 0.0 }
 0x270   : > { %v978_v55 = vmax.f32 %v924_v53, 0.0  ;;  %v1267_v56 = vpop.f32.mrb[8].mxu1 }
 0x271   : > { %v1268_v57 = vpop.f32.mrb[9].mxu1 }
 0x272   : > { %v1359_v58 = vpack.c.bf16 %v978_v55, %v977_v54  ;;  %v1269_v59 = vadd.f32 %v1268_v57, %v1267_v56  ;;  %v1270_v60 = vpop.f32.mrb[10].mxu1 }
 0x273   : > { %v1271_v61 = vpop.f32.mrb[11].mxu1 }
 0x274   : > { %v929_v62 = vadd.f32 %v1269_v59, %v2003_v39  ;;  %v1272_v63 = vadd.f32 %v1271_v61, %v1270_v60  ;;  %1360 = vmatpush3.bf16.xpose.msra.mxu1 %v1359_v58 }
 0x275   : > { %1361 = vmatprep.subr.bf16.mxu1 %v1688_v28 }
 0x276   : > { %v932_v0 = vadd.f32 %v1272_v63, %v2003_v39  ;;  %v979_v1 = vmax.f32 %v929_v62, 0.0  ;;  %v991_v63 = vld [vmem:[%s2087_s5] sm:$0xff] }
 0x278   : > { %v980_v2 = vmax.f32 %v932_v0, 0.0  ;;  %v1273_v3 = vpop.f32.mrb[12].mxu1  ;;  %v1066_v0 = vpop.permute.xlu0 %1065 }
 0x279   : > { %v1274_v4 = vpop.f32.mrb[13].mxu1 }
 0x27a   : > { %v1362_v5 = vpack.c.bf16 %v980_v2, %v979_v1  ;;  %v1275_v6 = vadd.f32 %v1274_v4, %v1273_v3  ;;  %v1276_v7 = vpop.f32.mrb[14].mxu1  ;;  %v1071_v1 = vrot.slane %v1066_v0, %v414_v35 }
 0x27b   : > { %v1277_v8 = vpop.f32.mrb[15].mxu1 }
 0x27c   : > { %v937_v9 = vadd.f32 %v1275_v6, %v2003_v39  ;;  %v1278_v10 = vadd.f32 %v1277_v8, %v1276_v7  ;;  %1363 = vmatpush3.bf16.xpose.msra.mxu1 %v1362_v5 }
 0x27d   : > { %1364 = vmatprep.subr.bf16.mxu1 %v1688_v28 }
 0x27e   : > { %v940_v11 = vadd.f32 %v1278_v10, %v2003_v39  ;;  %v981_v12 = vmax.f32 %v937_v9, 0.0 }
 0x280   : > { %v982_v13 = vmax.f32 %v940_v11, 0.0  ;;  %v1279_v14 = vpop.f32.mrb[16].mxu1 }
 0x281   : > { %v1280_v15 = vpop.f32.mrb[17].mxu1 }
 0x282   : > { %v1365_v16 = vpack.c.bf16 %v982_v13, %v981_v12  ;;  %v1281_v17 = vadd.f32 %v1280_v15, %v1279_v14  ;;  %v1282_v18 = vpop.f32.mrb[18].mxu1 }
 0x283   : > { %v1283_v19 = vpop.f32.mrb[19].mxu1 }
 0x284   : > { %v945_v20 = vadd.f32 %v1281_v17, %v2003_v39  ;;  %v1284_v21 = vadd.f32 %v1283_v19, %v1282_v18  ;;  %1366 = vmatpush3.bf16.xpose.msra.mxu1 %v1365_v16 }
 0x285   : > { %1367 = vmatprep.subr.bf16.mxu1 %v1688_v28 }
 0x286   : > { %v948_v22 = vadd.f32 %v1284_v21, %v2003_v39  ;;  %v983_v23 = vmax.f32 %v945_v20, 0.0 }
 0x288   : > { %v984_v24 = vmax.f32 %v948_v22, 0.0  ;;  %v1285_v25 = vpop.f32.mrb[20].mxu1 }
 0x289   : > { %v1286_v26 = vpop.f32.mrb[21].mxu1 }
 0x28a   : > { %v1368_v27 = vpack.c.bf16 %v984_v24, %v983_v23  ;;  %v1287_v29 = vadd.f32 %v1286_v26, %v1285_v25  ;;  %v1288_v30 = vpop.f32.mrb[22].mxu1 }
 0x28b   : > { %v1289_v38 = vpop.f32.mrb[23].mxu1 }
 0x28c   : > { %v953_v31 = vadd.f32 %v1287_v29, %v2003_v39  ;;  %v1290_v32 = vadd.f32 %v1289_v38, %v1288_v30  ;;  %1369 = vmatpush3.bf16.xpose.msra.mxu1 %v1368_v27 }
 0x28d   : > { %1370 = vmatprep.subr.bf16.mxu1 %v1688_v28 }
 0x28e   : > { %v956_v33 = vadd.f32 %v1290_v32, %v2003_v39  ;;  %v985_v36 = vmax.f32 %v953_v31, 0.0 }
 0x290   : > { %v986_v37 = vmax.f32 %v956_v33, 0.0  ;;  %v1291_v40 = vpop.f32.mrb[24].mxu1 }
 0x291   : > { %v1292_v41 = vpop.f32.mrb[25].mxu1 }
 0x292   : > { %v1371_v42 = vpack.c.bf16 %v986_v37, %v985_v36  ;;  %v1293_v43 = vadd.f32 %v1292_v41, %v1291_v40  ;;  %v1294_v44 = vpop.f32.mrb[26].mxu1 }
 0x293   : > { %v1295_v45 = vpop.f32.mrb[27].mxu1 }
 0x294   : > { %v961_v46 = vadd.f32 %v1293_v43, %v2003_v39  ;;  %v1296_v47 = vadd.f32 %v1295_v45, %v1294_v44  ;;  %1372 = vmatpush3.bf16.xpose.msra.mxu1 %v1371_v42 }
 0x295   : > { %1373 = vmatprep.subr.bf16.mxu1 %v1688_v28 }
 0x296   : > { %v964_v48 = vadd.f32 %v1296_v47, %v2003_v39  ;;  %v987_v49 = vmax.f32 %v961_v46, 0.0 }
 0x298   : > { %v988_v50 = vmax.f32 %v964_v48, 0.0  ;;  %v1297_v51 = vpop.f32.mrb[28].mxu1 }
 0x299   : > { %v1298_v52 = vpop.f32.mrb[29].mxu1 }
 0x29a   : > { %v1374_v53 = vpack.c.bf16 %v988_v50, %v987_v49  ;;  %v1299_v54 = vadd.f32 %v1298_v52, %v1297_v51  ;;  %v1300_v55 = vpop.f32.mrb[30].mxu1 }
 0x29b   : > { %v1301_v56 = vpop.f32.mrb[31].mxu1 }
 0x29c   : > { %v969_v57 = vadd.f32 %v1299_v54, %v2003_v39  ;;  %v1302_v58 = vadd.f32 %v1301_v56, %v1300_v55  ;;  %1375 = vmatpush3.bf16.xpose.msra.mxu1 %v1374_v53 }
 0x29d   : > { %1376 = vmatprep.subr.bf16.mxu1 %v1688_v28 }
 0x29e   : > { %v972_v59 = vadd.f32 %v1302_v58, %v2003_v39  ;;  %v989_v60 = vmax.f32 %v969_v57, 0.0 }
 0x2a0   : > { %v990_v61 = vmax.f32 %v972_v59, 0.0 }
 0x2a2   : > { %v1377_v62 = vpack.c.bf16 %v990_v61, %v989_v60 }
 0x2a4   : > { %1378 = vmatpush3.bf16.xpose.msra.mxu1 %v1377_v62 }
 0x2ab   : > { %1353 = vmatmul.mubr.f32.vlgmr.msra.gmra.mrb[32].mxu1 %v991_v63 }
 0x37e   : > { %v1058_v28 = vpop.f32.mrb[32].mxu1 }
 0x37f   : > { %v1072_v39 = vadd.f32 %v1071_v1, %v1058_v28  ;;  %v1354_v2 = vpop.f32.mrb[33].mxu1 }
 0x381   : > { %1073 = vst [vmem:[%s327_s12] sm:$0x1] %v1072_v39 }
 0x382   : > { %1620 = shalt.err (!%p1617_p2)
}
 0x383   : > { %s1621_s18 = scalar_lea.hbm %s2038_s15, 16  ;;  %s1625_s23 = scalar_lea.hbm %s2089_s7, 32 }
 0x384   : > { %p1622_p13 = scmp.ne.s32.totalorder %s2038_s15, %s1621_s18  ;;  %p1626_p4 = scmp.lt.u32.totalorder %s2038_s15, %s2089_s7 }
 0x385   : > { %p1627_p7 = scmp.lt.u32.totalorder %s1625_s23, %s1621_s18  ;;  %p1629_p11 = scmp.lt.u32.totalorder %s1621_s18, %s2038_s15 }
 0x386   : > { %p1623_p6 = pnand %p1622_p13, %p2103_p0 }
 0x387   : > { %p1628_p8 = por %p1627_p7, %p1626_p4 }
 0x388   : > { %p1624_p10 = pneg %p1623_p6 }
 0x389   : > { %p1630_p1 = por %p1629_p11, %p1628_p8 }
 0x38b   : > { %p1631_p3 = pnand %p1630_p1, %p1624_p10 }
 0x38d   : > { %1634 = shalt.err (!%p1631_p3)
}
 0x38e   : > { %1389 = dma.vmem_to_hbm [thread:$0]  (%p2103_p0), %s2040_s11, 16, %s2038_s15, %s1075_s19  }
 0x38f PF: > { %s1099_s12 = sand.u32 1, %s1665_s26   ;;  %p2104_p5 = scmp.ne.s32.totalorder %s2094_s9, 0 }
 0x390   : > { %p2105_p9 = scmp.ge.s32.totalorder %s1677_s29, 2  ;;  %s1100_s25 = scalar_lea.sflag [#allocation5], %s1099_s12 }
 0x392   : > { %p1403_p12 = pnand %p2105_p9, %p2104_p5 }
 0x394   : > { %1660 = dma.done.wait (!%p1403_p12), %s1100_s25, 16  }
 0x395   : > { %1662 = vsyncadd (!%p1403_p12), %s1100_s25, 4294967280  ;;  %p23_p2 = scmp.ge.s32.totalorder %s1846_s30, 4   ;;  %s2106_s26 = smov %s1669_s27 }
 0x396   : > { %s2107_s27 = smov %s1673_s28  ;;  %s2108_s28 = smov %s1855_s16 }
 0x397   : > { %s2109_s29 = smov %s1846_s30  ;;  %25 = sbr.rel (!%p23_p2) target bundleno = 9 (0x9), region = 101 }
 0x39e   :  { %1104 = vsyncpa [#allocation4], 1 }
 0x39f   :  { %1106 = vsyncpa [#allocation4 + $0x1], 1 }
 0x3a0   :  { %1107 = vsyncpa [#allocation7], 1 }
 0x3a1   :  { %1108 = vsyncpa [#allocation5], 1 }
 0x3a2   :  { %1110 = vsyncpa [#allocation5 + $0x1], 1 }

// kernel: clip_regressor_forward.1
= control target key start
LH: loop header
LB: loop body
LE: loop exit
PB: predicated region body
PF: predicated region fallthrough
CT: control target
= control target key end

     0   :  { %s2082_s0 = inlined_call_operand.hbm [shape: f32[256,256], index: 0, kind: input, shape index: {}]   ;;  %s2083_s1 = inlined_call_operand.hbm [shape: bf16[256,256], index: 1, kind: input, shape index: {}]   ;;  %s2084_s2 = inlined_call_operand.vmem [shape: f32[1,256], index: 2, kind: input, shape index: {}]   ;;  %s2085_s3 = inlined_call_operand.hbm [shape: bf16[256,128], index: 3, kind: input, shape index: {}]   ;;  %s2086_s4 = inlined_call_operand.vmem [shape: f32[1,128], index: 4, kind: input, shape index: {}]   ;;  %s2087_s5 = inlined_call_operand.vmem [shape: f32[8,128], index: 5, kind: input, shape index: {}]   ;;  %s2088_s6 = inlined_call_operand.<no memory space> [shape: f32[1,1], index: 6, kind: input, shape index: {}]   ;;  %s2089_s7 = inlined_call_operand.hbm [shape: f32[2,1,128], index: 7, kind: output, shape index: {}]  }
   0x1   :  { %v12_v0 = vstv %s2088_s6 }
   0x2   :  { %13 = vst [vmem:[#allocation2] sm:$0x1] %v12_v0 }
   0x3   :  { %14 = vsyncpa [#allocation4], 0 }
   0x4   :  { %16 = vsyncpa [#allocation4 + $0x1], 0 }
   0x5   :  { %17 = vsyncpa [#allocation7], 0 }
   0x6   :  { %18 = vsyncpa [#allocation5], 0 }
   0x7   :  { %20 = vsyncpa [#allocation5 + $0x1], 0  ;;  %s1736_s26 = smov 0   ;;  %s1738_s27 = smov 0  }
   0x8   :  { %s1740_s28 = smov 0   ;;  %s1742_s29 = smov 0  }
   0x9 LB: > { %s1757_s6 = sadd.s32 4294967295, %s1677_s29   ;;  %s1172_s30 = sadd.s32 4294967294, %s1677_s29   ;;  %s1677_s29 = sphi %s1742_s29, %s2109_s29   ;;  %s1673_s28 = sphi %s1740_s28, %s2108_s28   ;;  %s1669_s27 = sphi %s1738_s27, %s2107_s27   ;;  %s1665_s26 = sphi %s1736_s26, %s2106_s26  }
   0xa   : > { %p46_p0 = scmp.ne.s32.totalorder %s1669_s27, %s1665_s26  ;;  %p2090_p1 = scmp.eq.s32.totalorder %s1757_s6, 0 }
   0xb   : > { %p202_p3 = scmp.eq.s32.totalorder %s1172_s30, 1  ;;  %p1173_p5 = scmp.ge.s32.totalorder %s1677_s29, 1 }
   0xc   : > { %p1766_p4 = por %p2090_p1, %p46_p0  ;;  %p209_p7 = scmp.lt.s32.totalorder %s1677_s29, 3 }
   0xd   : > { %p1771_p6 = por %p202_p3, %p46_p0  ;;  %s1679_s11 = smov [#allocation6]  }
   0xe   : > { %s2093_s8 = scalar_select %p1766_p4, 1, 0 }
   0xf   : > { %s2094_s9 = scalar_select %p1771_p6, 1, 0 }
  0x10   : > { %p1776_p8 = pnand %p1173_p5, %p209_p7  ;;  %s221_s12 = sshll.u32 %s1679_s11, 4  ;;  %s1780_s12 = int_to_ptr.vmem [resolvable:$true] %s221_s12 }
  0x11   : > { %s1680_s14 = smov [#allocation8]   ;;  %s1521_s18 = scalar_lea.hbm %s2083_s1, 4096 }
  0x12   : > { %p1391_p9 = pneg %p1776_p8  ;;  %s237_s15 = sshll.u32 %s1680_s14, 4  ;;  %s1791_s15 = int_to_ptr.vmem [resolvable:$true] %s237_s15 }
  0x13   : > { %p1522_p12 = scmp.ne.s32.totalorder %s2083_s1, %s1521_s18  ;;  %p1528_p5 = scmp.lt.u32.totalorder %s1521_s18, %s2083_s1 }
  0x14   : > { %p1787_p11 = pnand %p1391_p9, %p2090_p1 }
  0x16   : > { %p1523_p13 = pneg %p1787_p11 }
  0x18   : > { %p1524_p0 = pnand %p1523_p13, %p1522_p12 }
  0x1a   : > { %p1525_p3 = pneg %p1524_p0 }
  0x1c   : > { %p1530_p7 = pnand %p1528_p5, %p1525_p3 }
  0x1e   : > { %1533 = shalt.err (!%p1530_p7)
}
  0x1f   : > { %s1534_s23 = scalar_lea.vmem %s1780_s12, 4096  ;;  %p1542_p2 = scmp.lt.s32.totalorder %s1780_s12, %s1780_s12 }
  0x20   : > { %p1535_p9 = scmp.ne.s32.totalorder %s1780_s12, %s1534_s23  ;;  %p1543_p12 = scmp.lt.s32.totalorder %s1534_s23, %s1534_s23 }
  0x22   : > { %p1537_p10 = pnand %p1535_p9, %p1523_p13  ;;  %p1544_p0 = por %p1543_p12, %p1542_p2 }
  0x24   : > { %p1538_p1 = pneg %p1537_p10 }
  0x26   : > { %p1545_p6 = pnand %p1544_p0, %p1538_p1 }
  0x28   : > { %1548 = shalt.err (!%p1545_p6)
}
  0x29   : > { %s1681_s24 = smov 128   ;;  %s1682_s25 = smov 8  }
  0x2a   : > { %1394 = dma.hbm_to_vmem [thread:$0]  (!%p1787_p11), %s2083_s1, 4096, %s1780_s12, [#allocation7], %s1681_s24, %s1681_s24, %s1682_s25  }
  0x2b   : > { %s1549_s17 = scalar_lea.hbm %s2085_s3, 2048 }
  0x2c   : > { %p1550_p2 = scmp.ne.s32.totalorder %s2085_s3, %s1549_s17  ;;  %p1556_p10 = scmp.lt.u32.totalorder %s1549_s17, %s2085_s3 }
  0x2e   : > { %p1552_p1 = pnand %p1550_p2, %p1523_p13 }
  0x30   : > { %p1553_p6 = pneg %p1552_p1 }
  0x32   : > { %p1558_p3 = pnand %p1556_p10, %p1553_p6 }
  0x34   : > { %1561 = shalt.err (!%p1558_p3)
}
  0x35   : > { %s1562_s12 = scalar_lea.vmem %s1791_s15, 2048  ;;  %p1570_p12 = scmp.lt.s32.totalorder %s1791_s15, %s1791_s15 }
  0x36   : > { %p1563_p5 = scmp.ne.s32.totalorder %s1791_s15, %s1562_s12  ;;  %p1571_p0 = scmp.lt.s32.totalorder %s1562_s12, %s1562_s12 }
  0x38   : > { %p1565_p7 = pnand %p1563_p5, %p1523_p13  ;;  %p1572_p2 = por %p1571_p0, %p1570_p12 }
  0x3a   : > { %p1566_p9 = pneg %p1565_p7 }
  0x3c   : > { %p1573_p1 = pnand %p1572_p2, %p1566_p9 }
  0x3e   : > { %1576 = shalt.err (!%p1573_p1)
}
  0x3f   : > { %s1683_s22 = smov 64   ;;  %s1684_s23 = smov 4  }
  0x40   : > { %1397 = dma.hbm_to_vmem [thread:$0]  (!%p1787_p11), %s2085_s3, 2048, %s1791_s15, [#allocation7], %s1683_s22, %s1683_s22, %s1684_s23  }
  0x41   : > { %s1846_s30 = sadd.s32 1, %s1677_s29   ;;  %s33_s14 = sadd.s32 1, %s1673_s28 }
  0x42   : > { %s30_s11 = ssub.s32 %s1677_s29, %s1846_s30  ;;  %p40_p6 = scmp.ne.s32.totalorder %s1673_s28, %s1669_s27 }
  0x43   : > { %p31_p13 = scmp.eq.s32.totalorder %s30_s11, 0  ;;  %p41_p10 = scmp.eq.s32.totalorder %s1677_s29, 0 }
  0x44   : > { %p2097_p5 = scmp.eq.s32.totalorder %s1757_s6, 1  ;;  %p1408_p9 = scmp.lt.s32.totalorder %s1677_s29, 2 }
  0x45   : > { %s1855_s16 = scalar_select %p31_p13, %s1673_s28, %s33_s14  }
  0x46   : > { %p42_p3 = por %p41_p10, %p40_p6  ;;  %p1859_p7 = por %p2097_p5, %p40_p6 }
  0x47   : > { %s260_s13 = sand.u32 1, %s1673_s28   ;;  %s1238_s15 = sshll.u32 %s1677_s29, 12 }
  0x48   : > { %s2098_s17 = scalar_select %p1859_p7, 1, 0 }
  0x49   : > { %s1177_s18 = sshll.u32 %s260_s13, 8  ;;  %s1869_s21 = scalar_lea.hbm %s2082_s0, %s1238_s15 }
  0x4a   : > { %s264_s12 = scalar_lea.vmem [#allocation3], %s1177_s18  ;;  %p1873_p11 = pnand %p1408_p9, %p42_p3 }
  0x4b   : > { %s272_s22 = sshll.u32 %s264_s12, 4  ;;  %s1877_s24 = scalar_lea.sflag [#allocation4], %s260_s13  ;;  %s1871_s22 = int_to_ptr.vmem [resolvable:$true] %s272_s22 }
  0x4c   : > { %s1577_s25 = scalar_lea.hbm %s1869_s21, 4096  ;;  %p1579_p0 = pneg %p1873_p11 }
  0x4d   : > { %p1578_p12 = scmp.ne.s32.totalorder %s1869_s21, %s1577_s25  ;;  %s1582_s18 = scalar_lea.hbm %s2082_s0, 8192 }
  0x4e   : > { %p1583_p13 = scmp.lt.u32.totalorder %s1869_s21, %s2082_s0  ;;  %p1584_p6 = scmp.lt.u32.totalorder %s1582_s18, %s1577_s25 }
  0x4f   : > { %p1580_p2 = pnand %p1579_p0, %p1578_p12  ;;  %p1586_p3 = scmp.lt.u32.totalorder %s1577_s25, %s1869_s21 }
  0x50   : > { %p1585_p10 = por %p1584_p6, %p1583_p13 }
  0x51   : > { %p1581_p1 = pneg %p1580_p2 }
  0x52   : > { %p1587_p5 = por %p1586_p3, %p1585_p10 }
  0x54   : > { %p1588_p9 = pnand %p1587_p5, %p1581_p1 }
  0x56   : > { %1591 = shalt.err (!%p1588_p9)
}
  0x57   : > { %s1592_s13 = scalar_lea.vmem %s1871_s22, 4096  ;;  %s1685_s20 = smov [#allocation3]  }
  0x58   : > { %p1593_p12 = scmp.ne.s32.totalorder %s1871_s22, %s1592_s13  ;;  %s1597_s12 = sshll.u32 %s1685_s20, 4  ;;  %s1598_s12 = int_to_ptr.vmem [resolvable:$false] %s1597_s12 }
  0x59   : > { %s1599_s11 = scalar_lea.vmem %s1598_s12, 8192  ;;  %p1600_p4 = scmp.lt.s32.totalorder %s1871_s22, %s1598_s12 }
  0x5a   : > { %p1595_p2 = pnand %p1593_p12, %p1579_p0  ;;  %p1601_p13 = scmp.lt.s32.totalorder %s1599_s11, %s1592_s13 }
  0x5c   : > { %p1596_p7 = pneg %p1595_p2  ;;  %p1602_p6 = por %p1601_p13, %p1600_p4 }
  0x5e   : > { %p1603_p10 = pnand %p1602_p6, %p1596_p7 }
  0x60   : > { %1606 = shalt.err (!%p1603_p10)
}
  0x61   : > { %s1686_s25 = smov 256   ;;  %s1687_s14 = smov 16  }
  0x62   : > { %1401 = dma.hbm_to_vmem [thread:$0]  (!%p1873_p11), %s1869_s21, 4096, %s1871_s22, %s1877_s24, %s1686_s25, %s1686_s25, %s1687_s14  }
  0x63   : > { %284 = sbr.rel (%p1776_p8) target bundleno = 911 (0x38f), region = 48  ;;  %s1908_s18 = sand.u32 (!%p1776_p8), 1, %s1669_s27  }
  0x64   : > { %s1182_s15 = sshll.u32 (!%p1776_p8), %s1908_s18, 8  ;;  %s287_s19 = scalar_lea.sflag (!%p1776_p8), [#allocation4], %s1908_s18 }
  0x65   : > { %s1912_s13 = scalar_lea.vmem (!%p1776_p8), [#allocation3], %s1182_s15  ;;  %p2100_p4 = scmp.ne.s32.totalorder (!%p1776_p8), %s2093_s8, 0 }
  0x6a   : > { %1652 = dma.done.wait (%p2100_p4), %s287_s19, 4096  }
  0x6b   : > { %1654 = vsyncadd (%p2100_p4), %s287_s19, 4294963200  ;;  %p2101_p7 = scmp.eq.s32.totalorder %s1757_s6, 0 }
  0x6d   : > { %1656 = dma.done.wait (%p2101_p7), [#allocation7], 6144   ;;  %p2102_p8 = pmov %p2101_p7 }
  0x6e   : > { %v1457_v1 = vld [vmem:[#allocation6 + $0x4] ss:$8 sps:$4 sm:$0xff]   ;;  %v1459_v2 = vld [vmem:[#allocation6] ss:$8 sps:$4 sm:$0xff]   ;;  %v1460_v3 = vld [vmem:[#allocation6 + $0x14] ss:$8 sps:$4 sm:$0xff]  }
  0x6f   : > { %1658 = vsyncadd (%p2102_p8), [#allocation7], 4294961152  ;;  %582 = vmatprep.subr.bf16.mxu0 %v1457_v1  ;;  %v1462_v4 = vld [vmem:[#allocation6 + $0x10] ss:$8 sps:$4 sm:$0xff]   ;;  %v1463_v5 = vld [vmem:[#allocation6 + $0x24] ss:$8 sps:$4 sm:$0xff]  }
  0x70   : > { %583 = vmatpush1.bf16.msra.mxu0 %v1459_v2  ;;  %v1465_v6 = vld [vmem:[#allocation6 + $0x20] ss:$8 sps:$4 sm:$0xff]   ;;  %v1466_v7 = vld [vmem:[#allocation6 + $0x34] ss:$8 sps:$4 sm:$0xff]   ;;  %v1468_v8 = vld [vmem:[#allocation6 + $0x30] ss:$8 sps:$4 sm:$0xff]  }
  0x71   : > { %584 = vmatprep.subr.bf16.mxu0 %v1460_v3  ;;  %v1469_v9 = vld [vmem:[#allocation6 + $0x44] ss:$8 sps:$4 sm:$0xff]   ;;  %v1471_v10 = vld [vmem:[#allocation6 + $0x40] ss:$8 sps:$4 sm:$0xff]   ;;  %v1472_v11 = vld [vmem:[#allocation6 + $0x54] ss:$8 sps:$4 sm:$0xff]  }
  0x72   : > { %v1474_v12 = vld [vmem:[#allocation6 + $0x50] ss:$8 sps:$4 sm:$0xff]   ;;  %v1475_v13 = vld [vmem:[#allocation6 + $0x64] ss:$8 sps:$4 sm:$0xff]   ;;  %v1477_v17 = vld [vmem:[#allocation6 + $0x60] ss:$8 sps:$4 sm:$0xff]  }
  0x73   : > { %v331_v14 = vld [vmem:[%s1912_s13 + $0x8] sm:$0xff]  ;;  %v333_v15 = vld [vmem:[%s1912_s13 + $0x18] sm:$0xff]  ;;  %v1505_v23 = vld [vmem:[#allocation8 + $0x40] sm:$0xff]   ;;  %vm1689_vm0 = vmmov 0   ;;  %s1234_s20 = sshll.u32 %s1757_s6, 4  ;;  %s327_s12 = scalar_lea.vmem [#allocation9], %s1908_s18 }
  0x74   : > { %585 = vmatpush1.bf16.msra.mxu0 %v1462_v4  ;;  %v363_v16 = vpack.c.bf16 %v333_v15, %v331_v14  ;;  %v1478_v18 = vld [vmem:[#allocation6 + $0x74] ss:$8 sps:$4 sm:$0xff]   ;;  %v1480_v19 = vld [vmem:[#allocation6 + $0x70] ss:$8 sps:$4 sm:$0xff]   ;;  %v1481_v20 = vld [vmem:[#allocation6 + $0x84] ss:$8 sps:$4 sm:$0xff]   ;;  %1239 = vmatprep.subr.bf16.mxu1 %v1505_v23  ;;  %s2038_s15 = scalar_lea.hbm %s2089_s7, %s1234_s20 }
  0x75   : > { %586 = vmatprep.subr.bf16.mxu0 %v1463_v5  ;;  %v1483_v21 = vld [vmem:[#allocation6 + $0x80] ss:$8 sps:$4 sm:$0xff]   ;;  %v1484_v22 = vld [vmem:[#allocation6 + $0x94] ss:$8 sps:$4 sm:$0xff]   ;;  %v1486_v24 = vld [vmem:[#allocation6 + $0x90] ss:$8 sps:$4 sm:$0xff]  }
  0x76   : > { %614 = vmatprep.mubr.bf16.mxu0 %v363_v16  ;;  %v1506_v25 = vld [vmem:[#allocation8] sm:$0xff]   ;;  %v1507_v27 = vld [vmem:[#allocation8 + $0x48] sm:$0xff]   ;;  %v1509_v29 = vld [vmem:[#allocation8 + $0x50] sm:$0xff]   ;;  %s1087_s11 = sshll.u32 %s327_s12, 4  ;;  %s1075_s19 = scalar_lea.sflag [#allocation5], %s1908_s18  ;;  %s2040_s11 = int_to_ptr.vmem [resolvable:$true] %s1087_s11 }
  0x77   : > { %v1487_v26 = vld [vmem:[#allocation6 + $0xa4] ss:$8 sps:$4 sm:$0xff]   ;;  %1240 = vmatpush3.bf16.msra.mxu1 %v1506_v25  ;;  %v1489_v30 = vld [vmem:[#allocation6 + $0xa0] ss:$8 sps:$4 sm:$0xff]   ;;  %v1490_v31 = vld [vmem:[#allocation6 + $0xb4] ss:$8 sps:$4 sm:$0xff]  }
  0x78   : > { %587 = vmatpush1.bf16.msra.mxu0 %v1465_v6  ;;  %v1508_v28 = vld [vmem:[#allocation8 + $0x8] sm:$0xff]   ;;  %1241 = vmatprep.subr.bf16.mxu1 %v1507_v27  ;;  %v1510_v32 = vld [vmem:[#allocation8 + $0x10] sm:$0xff]   ;;  %v1511_v33 = vld [vmem:[#allocation8 + $0x58] sm:$0xff]   ;;  %p2103_p0 = scmp.ne.s32.totalorder %s2098_s17, 0  ;;  %s1692_s6 = smov [#allocation9]  }
  0x79   : > { %588 = vmatprep.subr.bf16.mxu0 %v1466_v7  ;;  %v1492_v34 = vld [vmem:[#allocation6 + $0xb0] ss:$8 sps:$4 sm:$0xff]   ;;  %v1493_v35 = vld [vmem:[#allocation6 + $0xc4] ss:$8 sps:$4 sm:$0xff]   ;;  %v1495_v38 = vld [vmem:[#allocation6 + $0xc0] ss:$8 sps:$4 sm:$0xff]  }
  0x7a   : > { %v1512_v36 = vld [vmem:[#allocation8 + $0x18] sm:$0xff]   ;;  %v1513_v37 = vld [vmem:[#allocation8 + $0x60] sm:$0xff]   ;;  %v1515_v41 = vld [vmem:[#allocation8 + $0x68] sm:$0xff]   ;;  %s1611_s8 = sshll.u32 %s1692_s6, 4  ;;  %s1612_s8 = int_to_ptr.vmem [resolvable:$false] %s1611_s8 }
  0x7b   : > { %1242 = vmatpush3.bf16.msra.mxu1 %v1508_v28  ;;  %v1514_v39 = vld [vmem:[#allocation8 + $0x20] sm:$0xff]   ;;  %v1496_v40 = vld [vmem:[#allocation6 + $0xd4] ss:$8 sps:$4 sm:$0xff]   ;;  %v1498_v42 = vld [vmem:[#allocation6 + $0xd0] ss:$8 sps:$4 sm:$0xff]   ;;  %s1613_s10 = scalar_lea.vmem %s1612_s8, 32  ;;  %p1614_p5 = scmp.lt.s32.totalorder %s2040_s11, %s1612_s8 }
  0x7c   : > { %589 = vmatpush1.bf16.msra.mxu0 %v1468_v8  ;;  %1243 = vmatprep.subr.bf16.mxu1 %v1509_v29  ;;  %v1499_v43 = vld [vmem:[#allocation6 + $0xe4] ss:$8 sps:$4 sm:$0xff]   ;;  %v1501_v44 = vld [vmem:[#allocation6 + $0xe0] ss:$8 sps:$4 sm:$0xff]   ;;  %v1502_v45 = vld [vmem:[#allocation6 + $0xf4] ss:$8 sps:$4 sm:$0xff]  }
  0x7d   : > { %590 = vmatprep.subr.bf16.mxu0 %v1469_v9  ;;  %v1504_v46 = vld [vmem:[#allocation6 + $0xf0] ss:$8 sps:$4 sm:$0xff]   ;;  %v330_v47 = vld [vmem:[%s1912_s13] sm:$0xff]  ;;  %v335_v49 = vld [vmem:[%s1912_s13 + $0x28] sm:$0xff] }
  0x7e   : > { %v332_v48 = vld [vmem:[%s1912_s13 + $0x10] sm:$0xff]  ;;  %v337_v50 = vld [vmem:[%s1912_s13 + $0x38] sm:$0xff]  ;;  %v334_v53 = vld [vmem:[%s1912_s13 + $0x20] sm:$0xff] }
  0x7f   : > { %1244 = vmatpush3.bf16.msra.mxu1 %v1510_v32  ;;  %v362_v51 = vpack.c.bf16 %v332_v48, %v330_v47  ;;  %v365_v52 = vpack.c.bf16 %v337_v50, %v335_v49  ;;  %v336_v54 = vld [vmem:[%s1912_s13 + $0x30] sm:$0xff]  ;;  %v339_v55 = vld [vmem:[%s1912_s13 + $0x48] sm:$0xff]  ;;  %v341_v56 = vld [vmem:[%s1912_s13 + $0x58] sm:$0xff] }
  0x80   : > { %591 = vmatpush1.bf16.msra.mxu0 %v1471_v10  ;;  %1245 = vmatprep.subr.bf16.mxu1 %v1511_v33  ;;  %v364_v57 = vpack.c.bf16 %v336_v54, %v334_v53  ;;  %v367_v58 = vpack.c.bf16 %v341_v56, %v339_v55  ;;  %v338_v59 = vld [vmem:[%s1912_s13 + $0x40] sm:$0xff]  ;;  %v340_v60 = vld [vmem:[%s1912_s13 + $0x50] sm:$0xff]  ;;  %v343_v61 = vld [vmem:[%s1912_s13 + $0x68] sm:$0xff]  ;;  %v412_v33 = vlaneseq }
  0x81   : > { %592 = vmatprep.subr.bf16.mxu0 %v1472_v11  ;;  %v345_v62 = vld [vmem:[%s1912_s13 + $0x78] sm:$0xff]  ;;  %v366_v63 = vpack.c.bf16 %v340_v60, %v338_v59  ;;  %v342_v1 = vld [vmem:[%s1912_s13 + $0x60] sm:$0xff]  ;;  %v344_v2 = vld [vmem:[%s1912_s13 + $0x70] sm:$0xff] }
  0x82   : > { %v369_v0 = vpack.c.bf16 %v345_v62, %v343_v61  ;;  %v347_v3 = vld [vmem:[%s1912_s13 + $0x88] sm:$0xff]  ;;  %v349_v4 = vld [vmem:[%s1912_s13 + $0x98] sm:$0xff]  ;;  %v368_v5 = vpack.c.bf16 %v344_v2, %v342_v1  ;;  %v346_v7 = vld [vmem:[%s1912_s13 + $0x80] sm:$0xff] }
  0x83   : > { %1246 = vmatpush3.bf16.msra.mxu1 %v1512_v36  ;;  %v371_v6 = vpack.c.bf16 %v349_v4, %v347_v3  ;;  %v348_v8 = vld [vmem:[%s1912_s13 + $0x90] sm:$0xff]  ;;  %v351_v9 = vld [vmem:[%s1912_s13 + $0xa8] sm:$0xff]  ;;  %v353_v10 = vld [vmem:[%s1912_s13 + $0xb8] sm:$0xff] }
  0x84   : > { %593 = vmatpush1.bf16.msra.mxu0 %v1474_v12  ;;  %1247 = vmatprep.subr.bf16.mxu1 %v1513_v37  ;;  %v370_v11 = vpack.c.bf16 %v348_v8, %v346_v7  ;;  %v373_v12 = vpack.c.bf16 %v353_v10, %v351_v9  ;;  %v352_v14 = vld [vmem:[%s1912_s13 + $0xb0] sm:$0xff]  ;;  %v355_v15 = vld [vmem:[%s1912_s13 + $0xc8] sm:$0xff]  ;;  %v357_v16 = vld [vmem:[%s1912_s13 + $0xd8] sm:$0xff] }
  0x85   : > { %594 = vmatprep.subr.bf16.mxu0 %v1475_v13  ;;  %v350_v13 = vld [vmem:[%s1912_s13 + $0xa0] sm:$0xff]  ;;  %v1516_v28 = vld [vmem:[#allocation8 + $0x28] sm:$0xff]   ;;  %v1517_v29 = vld [vmem:[#allocation8 + $0x70] sm:$0xff]  }
  0x86   : > { %v358_v25 = vld [vmem:[%s1912_s13 + $0xe0] sm:$0xff]  ;;  %v1520_v32 = vld [vmem:[#allocation8 + $0x38] sm:$0xff]  }
  0x87   : > { %1248 = vmatpush3.bf16.msra.mxu1 %v1514_v39  ;;  %v410_v36 = vld [vmem:[%s2084_s2] sm:$0x3] }
  0x88   : > { %595 = vmatpush1.bf16.msra.mxu0 %v1477_v17  ;;  %1249 = vmatprep.subr.bf16.mxu1 %v1515_v41  ;;  %v372_v17 = vpack.c.bf16 %v352_v14, %v350_v13 }
  0x89   : > { %596 = vmatprep.subr.bf16.mxu0 %v1478_v18  ;;  %v375_v18 = vpack.c.bf16 %v357_v16, %v355_v15 }
  0x8b   : > { %1250 = vmatpush3.bf16.msra.mxu1 %v1516_v28 }
  0x8c   : > { %597 = vmatpush1.bf16.msra.mxu0 %v1480_v19  ;;  %v354_v19 = vld [vmem:[%s1912_s13 + $0xc0] sm:$0xff]  ;;  %1251 = vmatprep.subr.bf16.mxu1 %v1517_v29 }
  0x8d   : > { %598 = vmatprep.subr.bf16.mxu0 %v1481_v20  ;;  %v356_v20 = vld [vmem:[%s1912_s13 + $0xd0] sm:$0xff] }
  0x8e   : > { %v374_v23 = vpack.c.bf16 %v356_v20, %v354_v19 }
  0x90   : > { %599 = vmatpush1.bf16.msra.mxu0 %v1483_v21  ;;  %v359_v21 = vld [vmem:[%s1912_s13 + $0xe8] sm:$0xff] }
  0x91   : > { %600 = vmatprep.subr.bf16.mxu0 %v1484_v22  ;;  %v361_v22 = vld [vmem:[%s1912_s13 + $0xf8] sm:$0xff] }
  0x94   : > { %601 = vmatpush1.bf16.msra.mxu0 %v1486_v24  ;;  %v377_v24 = vpack.c.bf16 %v361_v22, %v359_v21 }
  0x95   : > { %602 = vmatprep.subr.bf16.mxu0 %v1487_v26  ;;  %v360_v26 = vld [vmem:[%s1912_s13 + $0xf0] sm:$0xff]  ;;  %s1607_s13 = scalar_lea.vmem %s2040_s11, 16 }
  0x96   : > { %v376_v27 = vpack.c.bf16 %v360_v26, %v358_v25  ;;  %p1608_p11 = scmp.ne.s32.totalorder %s2040_s11, %s1607_s13  ;;  %p1615_p9 = scmp.lt.s32.totalorder %s1613_s10, %s1607_s13 }
  0x98   : > { %603 = vmatpush1.bf16.msra.mxu0 %v1489_v30  ;;  %v1518_v30 = vld [vmem:[#allocation8 + $0x30] sm:$0xff]   ;;  %p1609_p1 = pnand %p1608_p11, %p2103_p0  ;;  %p1616_p12 = por %p1615_p9, %p1614_p5 }
  0x99   : > { %604 = vmatprep.subr.bf16.mxu0 %v1490_v31  ;;  %1252 = vmatpush3.bf16.msra.mxu1 %v1518_v30  ;;  %v1519_v31 = vld [vmem:[#allocation8 + $0x78] sm:$0xff]  }
  0x9a   : > { %1253 = vmatprep.subr.bf16.mxu1 %v1519_v31  ;;  %p1610_p3 = pneg %p1609_p1 }
  0x9c   : > { %605 = vmatpush1.bf16.msra.mxu0 %v1492_v34  ;;  %v1954_v34 = vshrl.u32 %v412_v33, 7  ;;  %p1617_p2 = pnand %p1616_p12, %p1610_p3 }
  0x9d   : > { %606 = vmatprep.subr.bf16.mxu0 %v1493_v35  ;;  %1254 = vmatpush3.bf16.msra.mxu1 %v1520_v32 }
  0x9e   : > { %v414_v35 = vsub.s32 0, %v1954_v34  ;;  %v418_v37 = vsub.s32 1, %v1954_v34 }
  0xa0   : > { %607 = vmatpush1.bf16.msra.mxu0 %v1495_v38  ;;  %v1963_v38 = vrot.slane %v410_v36, %v414_v35  ;;  %v1965_v39 = vrot.slane %v410_v36, %v418_v37 }
  0xa1   : > { %608 = vmatprep.subr.bf16.mxu0 %v1496_v40 }
  0xa4   : > { %609 = vmatpush1.bf16.msra.mxu0 %v1498_v42 }
  0xa5   : > { %610 = vmatprep.subr.bf16.mxu0 %v1499_v43 }
  0xa8   : > { %611 = vmatpush1.bf16.msra.mxu0 %v1501_v44 }
  0xa9   : > { %612 = vmatprep.subr.bf16.mxu0 %v1502_v45 }
  0xac   : > { %613 = vmatpush1.bf16.msra.mxu0 %v1504_v46 }
  0xaf   : > { %615 = vmatmul.mubr.bf16.vlgmr.msra.gmra.mrb[0].mxu0 %v362_v51 }
  0xb0   : > { %624 = vmatprep.mubr.bf16.mxu0 %v365_v52 }
  0xb7   : > { %625 = vmatmul.mubr.bf16.gmra.mrb[4].mxu0 %v364_v57 }
  0xb8   : > { %634 = vmatprep.mubr.bf16.mxu0 %v367_v58 }
  0xbf   : > { %635 = vmatmul.mubr.bf16.gmra.mrb[8].mxu0 %v366_v63 }
  0xc0   : > { %644 = vmatprep.mubr.bf16.mxu0 %v369_v0 }
  0xc7   : > { %645 = vmatmul.mubr.bf16.gmra.mrb[12].mxu0 %v368_v5 }
  0xc8   : > { %654 = vmatprep.mubr.bf16.mxu0 %v371_v6 }
  0xcf   : > { %655 = vmatmul.mubr.bf16.gmra.mrb[16].mxu0 %v370_v11 }
  0xd0   : > { %664 = vmatprep.mubr.bf16.mxu0 %v373_v12 }
  0xd7   : > { %665 = vmatmul.mubr.bf16.gmra.mrb[20].mxu0 %v372_v17 }
  0xd8   : > { %674 = vmatprep.mubr.bf16.mxu0 %v375_v18 }
  0xdf   : > { %675 = vmatmul.mubr.bf16.gmra.mrb[24].mxu0 %v374_v23 }
  0xe0   : > { %684 = vmatprep.mubr.bf16.mxu0 %v377_v24 }
  0xe7   : > { %685 = vmatmul.mubr.bf16.gmra.mrb[28].mxu0 %v376_v27 }
 0x182   : > { %v616_v40 = vpop.f32.mrb[0].mxu0 }
 0x183   : > { %v617_v41 = vadd.f32 %v616_v40, %v1963_v38  ;;  %v618_v42 = vpop.f32.mrb[1].mxu0 }
 0x184   : > { %v619_v43 = vadd.f32 %v618_v42, %v1965_v39  ;;  %v620_v44 = vpop.f32.mrb[2].mxu0 }
 0x185   : > { %v621_v45 = vadd.f32 %v620_v44, %v1963_v38  ;;  %v622_v46 = vpop.f32.mrb[3].mxu0  ;;  %v695_v48 = vmax.f32 %v617_v41, 0.0 }
 0x186   : > { %v623_v47 = vadd.f32 %v622_v46, %v1965_v39  ;;  %v696_v50 = vmax.f32 %v619_v43, 0.0 }
 0x187   : > { %v697_v49 = vmax.f32 %v621_v45, 0.0 }
 0x188   : > { %v698_v51 = vmax.f32 %v623_v47, 0.0 }
 0x189   : > { %v727_v52 = vpack.c.bf16 %v697_v49, %v695_v48 }
 0x18a   : > { %v626_v53 = vpop.f32.mrb[4].mxu0  ;;  %v728_v54 = vpack.c.bf16 %v698_v51, %v696_v50 }
 0x18b   : > { %v627_v55 = vadd.f32 %v626_v53, %v1963_v38  ;;  %v628_v56 = vpop.f32.mrb[5].mxu0 }
 0x18c   : > { %v629_v57 = vadd.f32 %v628_v56, %v1965_v39  ;;  %v630_v58 = vpop.f32.mrb[6].mxu0  ;;  %910 = vmatprep.mubr.bf16.mxu1 %v728_v54 }
 0x18d   : > { %v631_v59 = vadd.f32 %v630_v58, %v1963_v38  ;;  %v632_v60 = vpop.f32.mrb[7].mxu0  ;;  %911 = vmatmul.mubr.bf16.vlgmr.msra.gmra.mrb[0].mxu1 %v727_v52  ;;  %v699_v62 = vmax.f32 %v627_v55, 0.0 }
 0x18e   : > { %v633_v61 = vadd.f32 %v632_v60, %v1965_v39  ;;  %v700_v0 = vmax.f32 %v629_v57, 0.0 }
 0x18f   : > { %v701_v63 = vmax.f32 %v631_v59, 0.0 }
 0x190   : > { %v702_v1 = vmax.f32 %v633_v61, 0.0 }
 0x191   : > { %v729_v2 = vpack.c.bf16 %v701_v63, %v699_v62 }
 0x192   : > { %v730_v3 = vpack.c.bf16 %v702_v1, %v700_v0  ;;  %v636_v4 = vpop.f32.mrb[8].mxu0 }
 0x193   : > { %v637_v5 = vadd.f32 %v636_v4, %v1963_v38  ;;  %v638_v6 = vpop.f32.mrb[9].mxu0 }
 0x194   : > { %v639_v7 = vadd.f32 %v638_v6, %v1965_v39  ;;  %v640_v8 = vpop.f32.mrb[10].mxu0  ;;  %918 = vmatprep.mubr.bf16.mxu1 %v730_v3 }
 0x195   : > { %v641_v9 = vadd.f32 %v640_v8, %v1963_v38  ;;  %v642_v10 = vpop.f32.mrb[11].mxu0  ;;  %919 = vmatmul.mubr.bf16.gmra.mrb[4].mxu1 %v729_v2  ;;  %v703_v12 = vmax.f32 %v637_v5, 0.0 }
 0x196   : > { %v643_v11 = vadd.f32 %v642_v10, %v1965_v39  ;;  %v704_v14 = vmax.f32 %v639_v7, 0.0 }
 0x197   : > { %v705_v13 = vmax.f32 %v641_v9, 0.0 }
 0x198   : > { %v706_v15 = vmax.f32 %v643_v11, 0.0 }
 0x199   : > { %v731_v16 = vpack.c.bf16 %v705_v13, %v703_v12 }
 0x19a   : > { %v732_v17 = vpack.c.bf16 %v706_v15, %v704_v14  ;;  %v646_v18 = vpop.f32.mrb[12].mxu0 }
 0x19b   : > { %v647_v19 = vadd.f32 %v646_v18, %v1963_v38  ;;  %v648_v20 = vpop.f32.mrb[13].mxu0 }
 0x19c   : > { %v649_v21 = vadd.f32 %v648_v20, %v1965_v39  ;;  %v650_v22 = vpop.f32.mrb[14].mxu0  ;;  %926 = vmatprep.mubr.bf16.mxu1 %v732_v17 }
 0x19d   : > { %v651_v23 = vadd.f32 %v650_v22, %v1963_v38  ;;  %v652_v24 = vpop.f32.mrb[15].mxu0  ;;  %927 = vmatmul.mubr.bf16.gmra.mrb[8].mxu1 %v731_v16  ;;  %v707_v26 = vmax.f32 %v647_v19, 0.0 }
 0x19e   : > { %v653_v25 = vadd.f32 %v652_v24, %v1965_v39  ;;  %v708_v28 = vmax.f32 %v649_v21, 0.0 }
 0x19f   : > { %v709_v27 = vmax.f32 %v651_v23, 0.0 }
 0x1a0   : > { %v710_v29 = vmax.f32 %v653_v25, 0.0 }
 0x1a1   : > { %v733_v30 = vpack.c.bf16 %v709_v27, %v707_v26 }
 0x1a2   : > { %v734_v31 = vpack.c.bf16 %v710_v29, %v708_v28  ;;  %v656_v32 = vpop.f32.mrb[16].mxu0  ;;  %v1688_v28 = vmov 0.0|0.0   ;;  %v1690_v29 = vmov 0.0  }
 0x1a3   : > { %v657_v33 = vadd.f32 %v656_v32, %v1963_v38  ;;  %v658_v36 = vpop.f32.mrb[17].mxu0  ;;  %1355 = vmatprep.subr.bf16.mxu1 %v1688_v28 }
 0x1a4   : > { %v659_v37 = vadd.f32 %v658_v36, %v1965_v39  ;;  %v660_v40 = vpop.f32.mrb[18].mxu0  ;;  %934 = vmatprep.mubr.bf16.mxu1 %v734_v31 }
 0x1a5   : > { %v661_v41 = vadd.f32 %v660_v40, %v1963_v38  ;;  %v662_v42 = vpop.f32.mrb[19].mxu0  ;;  %935 = vmatmul.mubr.bf16.gmra.mrb[12].mxu1 %v733_v30  ;;  %v711_v44 = vmax.f32 %v657_v33, 0.0  ;;  %v1062_v30 = vld [vmem:[#allocation2] sm:$0x1] }
 0x1a6   : > { %v663_v43 = vadd.f32 %v662_v42, %v1965_v39  ;;  %v712_v46 = vmax.f32 %v659_v37, 0.0 }
 0x1a7   : > { %v713_v45 = vmax.f32 %v661_v41, 0.0 }
 0x1a8   : > { %v714_v47 = vmax.f32 %v663_v43, 0.0 }
 0x1a9   : > { %v735_v48 = vpack.c.bf16 %v713_v45, %v711_v44 }
 0x1aa   : > { %v736_v49 = vpack.c.bf16 %v714_v47, %v712_v46  ;;  %v666_v50 = vpop.f32.mrb[20].mxu0 }
 0x1ab   : > { %v667_v51 = vadd.f32 %v666_v50, %v1963_v38  ;;  %v668_v52 = vpop.f32.mrb[21].mxu0 }
 0x1ac   : > { %v669_v53 = vadd.f32 %v668_v52, %v1965_v39  ;;  %v670_v54 = vpop.f32.mrb[22].mxu0  ;;  %942 = vmatprep.mubr.bf16.mxu1 %v736_v49 }
 0x1ad   : > { %v671_v55 = vadd.f32 %v670_v54, %v1963_v38  ;;  %v672_v56 = vpop.f32.mrb[23].mxu0  ;;  %943 = vmatmul.mubr.bf16.gmra.mrb[16].mxu1 %v735_v48  ;;  %v715_v58 = vmax.f32 %v667_v51, 0.0 }
 0x1ae   : > { %v673_v57 = vadd.f32 %v672_v56, %v1965_v39  ;;  %v716_v60 = vmax.f32 %v669_v53, 0.0 }
 0x1af   : > { %v717_v59 = vmax.f32 %v671_v55, 0.0 }
 0x1b0   : > { %v718_v61 = vmax.f32 %v673_v57, 0.0 }
 0x1b1   : > { %v737_v62 = vpack.c.bf16 %v717_v59, %v715_v58 }
 0x1b2   : > { %v738_v63 = vpack.c.bf16 %v718_v61, %v716_v60  ;;  %v676_v0 = vpop.f32.mrb[24].mxu0 }
 0x1b3   : > { %v677_v1 = vadd.f32 %v676_v0, %v1963_v38  ;;  %v678_v2 = vpop.f32.mrb[25].mxu0 }
 0x1b4   : > { %v679_v3 = vadd.f32 %v678_v2, %v1965_v39  ;;  %v680_v4 = vpop.f32.mrb[26].mxu0  ;;  %950 = vmatprep.mubr.bf16.mxu1 %v738_v63 }
 0x1b5   : > { %v681_v5 = vadd.f32 %v680_v4, %v1963_v38  ;;  %v682_v6 = vpop.f32.mrb[27].mxu0  ;;  %951 = vmatmul.mubr.bf16.gmra.mrb[20].mxu1 %v737_v62  ;;  %v719_v8 = vmax.f32 %v677_v1, 0.0 }
 0x1b6   : > { %v683_v7 = vadd.f32 %v682_v6, %v1965_v39  ;;  %v720_v10 = vmax.f32 %v679_v3, 0.0 }
 0x1b7   : > { %v721_v9 = vmax.f32 %v681_v5, 0.0 }
 0x1b8   : > { %v722_v11 = vmax.f32 %v683_v7, 0.0 }
 0x1b9   : > { %v739_v12 = vpack.c.bf16 %v721_v9, %v719_v8 }
 0x1ba   : > { %v740_v13 = vpack.c.bf16 %v722_v11, %v720_v10  ;;  %v686_v14 = vpop.f32.mrb[28].mxu0 }
 0x1bb   : > { %v687_v15 = vadd.f32 %v686_v14, %v1963_v38  ;;  %v688_v16 = vpop.f32.mrb[29].mxu0 }
 0x1bc   : > { %v689_v17 = vadd.f32 %v688_v16, %v1965_v39  ;;  %v690_v18 = vpop.f32.mrb[30].mxu0  ;;  %958 = vmatprep.mubr.bf16.mxu1 %v740_v13 }
 0x1bd   : > { %v691_v19 = vadd.f32 %v690_v18, %v1963_v38  ;;  %v692_v20 = vpop.f32.mrb[31].mxu0  ;;  %959 = vmatmul.mubr.bf16.gmra.mrb[24].mxu1 %v739_v12  ;;  %v723_v22 = vmax.f32 %v687_v15, 0.0  ;;  %v1691_v38 = vmov 0  }
 0x1be   : > { %v693_v21 = vadd.f32 %v692_v20, %v1965_v39  ;;  %v724_v24 = vmax.f32 %v689_v17, 0.0  ;;  %1456 = vset.pattern.permute.xlu0 %v1691_v38  ;;  %v2003_v39 = vld [vmem:[%s2086_s4] ss:$0 sm:$0xff] }
 0x1bf   : > { %v725_v23 = vmax.f32 %v691_v19, 0.0  ;;  %1065 = vperm.xlu0 %1456, %v1062_v30  }
 0x1c0   : > { %v726_v25 = vmax.f32 %v693_v21, 0.0 }
 0x1c1   : > { %v741_v26 = vpack.c.bf16 %v725_v23, %v723_v22 }
 0x1c2   : > { %v742_v27 = vpack.c.bf16 %v726_v25, %v724_v24 }
 0x1c4   : > { %966 = vmatprep.mubr.bf16.mxu1 %v742_v27 }
 0x1c5   : > { %967 = vmatmul.mubr.bf16.gmra.mrb[28].mxu1 %v741_v26 }
 0x1c6   : > { %1352 = vmatprep.mubr.msk.f32.mxu1 %vm1689_vm0, %v1690_v29 }
 0x260   : > { %v1255_v31 = vpop.f32.mrb[0].mxu1 }
 0x261   : > { %v1256_v32 = vpop.f32.mrb[1].mxu1 }
 0x262   : > { %v1257_v33 = vadd.f32 %v1256_v32, %v1255_v31  ;;  %v1258_v36 = vpop.f32.mrb[2].mxu1 }
 0x263   : > { %v1259_v37 = vpop.f32.mrb[3].mxu1 }
 0x264   : > { %v913_v40 = vadd.f32 %v1257_v33, %v2003_v39  ;;  %v1260_v41 = vadd.f32 %v1259_v37, %v1258_v36 }
 0x266   : > { %v916_v42 = vadd.f32 %v1260_v41, %v2003_v39  ;;  %v975_v43 = vmax.f32 %v913_v40, 0.0 }
 0x268   : > { %v976_v44 = vmax.f32 %v916_v42, 0.0  ;;  %v1261_v45 = vpop.f32.mrb[4].mxu1 }
 0x269   : > { %v1262_v46 = vpop.f32.mrb[5].mxu1 }
 0x26a   : > { %v1356_v47 = vpack.c.bf16 %v976_v44, %v975_v43  ;;  %v1263_v48 = vadd.f32 %v1262_v46, %v1261_v45  ;;  %v1264_v49 = vpop.f32.mrb[6].mxu1 }
 0x26b   : > { %v1265_v50 = vpop.f32.mrb[7].mxu1 }
 0x26c   : > { %v921_v51 = vadd.f32 %v1263_v48, %v2003_v39  ;;  %v1266_v52 = vadd.f32 %v1265_v50, %v1264_v49  ;;  %1357 = vmatpush3.bf16.xpose.msra.mxu1 %v1356_v47 }
 0x26d   : > { %1358 = vmatprep.subr.bf16.mxu1 %v1688_v28 }
 0x26e   : > { %v924_v53 = vadd.f32 %v1266_v52, %v2003_v39  ;;  %v977_v54 = vmax.f32 %v921_v51, 0.0 }
 0x270   : > { %v978_v55 = vmax.f32 %v924_v53, 0.0  ;;  %v1267_v56 = vpop.f32.mrb[8].mxu1 }
 0x271   : > { %v1268_v57 = vpop.f32.mrb[9].mxu1 }
 0x272   : > { %v1359_v58 = vpack.c.bf16 %v978_v55, %v977_v54  ;;  %v1269_v59 = vadd.f32 %v1268_v57, %v1267_v56  ;;  %v1270_v60 = vpop.f32.mrb[10].mxu1 }
 0x273   : > { %v1271_v61 = vpop.f32.mrb[11].mxu1 }
 0x274   : > { %v929_v62 = vadd.f32 %v1269_v59, %v2003_v39  ;;  %v1272_v63 = vadd.f32 %v1271_v61, %v1270_v60  ;;  %1360 = vmatpush3.bf16.xpose.msra.mxu1 %v1359_v58 }
 0x275   : > { %1361 = vmatprep.subr.bf16.mxu1 %v1688_v28 }
 0x276   : > { %v932_v0 = vadd.f32 %v1272_v63, %v2003_v39  ;;  %v979_v1 = vmax.f32 %v929_v62, 0.0  ;;  %v991_v63 = vld [vmem:[%s2087_s5] sm:$0xff] }
 0x278   : > { %v980_v2 = vmax.f32 %v932_v0, 0.0  ;;  %v1273_v3 = vpop.f32.mrb[12].mxu1  ;;  %v1066_v0 = vpop.permute.xlu0 %1065 }
 0x279   : > { %v1274_v4 = vpop.f32.mrb[13].mxu1 }
 0x27a   : > { %v1362_v5 = vpack.c.bf16 %v980_v2, %v979_v1  ;;  %v1275_v6 = vadd.f32 %v1274_v4, %v1273_v3  ;;  %v1276_v7 = vpop.f32.mrb[14].mxu1  ;;  %v1071_v1 = vrot.slane %v1066_v0, %v414_v35 }
 0x27b   : > { %v1277_v8 = vpop.f32.mrb[15].mxu1 }
 0x27c   : > { %v937_v9 = vadd.f32 %v1275_v6, %v2003_v39  ;;  %v1278_v10 = vadd.f32 %v1277_v8, %v1276_v7  ;;  %1363 = vmatpush3.bf16.xpose.msra.mxu1 %v1362_v5 }
 0x27d   : > { %1364 = vmatprep.subr.bf16.mxu1 %v1688_v28 }
 0x27e   : > { %v940_v11 = vadd.f32 %v1278_v10, %v2003_v39  ;;  %v981_v12 = vmax.f32 %v937_v9, 0.0 }
 0x280   : > { %v982_v13 = vmax.f32 %v940_v11, 0.0  ;;  %v1279_v14 = vpop.f32.mrb[16].mxu1 }
 0x281   : > { %v1280_v15 = vpop.f32.mrb[17].mxu1 }
 0x282   : > { %v1365_v16 = vpack.c.bf16 %v982_v13, %v981_v12  ;;  %v1281_v17 = vadd.f32 %v1280_v15, %v1279_v14  ;;  %v1282_v18 = vpop.f32.mrb[18].mxu1 }
 0x283   : > { %v1283_v19 = vpop.f32.mrb[19].mxu1 }
 0x284   : > { %v945_v20 = vadd.f32 %v1281_v17, %v2003_v39  ;;  %v1284_v21 = vadd.f32 %v1283_v19, %v1282_v18  ;;  %1366 = vmatpush3.bf16.xpose.msra.mxu1 %v1365_v16 }
 0x285   : > { %1367 = vmatprep.subr.bf16.mxu1 %v1688_v28 }
 0x286   : > { %v948_v22 = vadd.f32 %v1284_v21, %v2003_v39  ;;  %v983_v23 = vmax.f32 %v945_v20, 0.0 }
 0x288   : > { %v984_v24 = vmax.f32 %v948_v22, 0.0  ;;  %v1285_v25 = vpop.f32.mrb[20].mxu1 }
 0x289   : > { %v1286_v26 = vpop.f32.mrb[21].mxu1 }
 0x28a   : > { %v1368_v27 = vpack.c.bf16 %v984_v24, %v983_v23  ;;  %v1287_v29 = vadd.f32 %v1286_v26, %v1285_v25  ;;  %v1288_v30 = vpop.f32.mrb[22].mxu1 }
 0x28b   : > { %v1289_v38 = vpop.f32.mrb[23].mxu1 }
 0x28c   : > { %v953_v31 = vadd.f32 %v1287_v29, %v2003_v39  ;;  %v1290_v32 = vadd.f32 %v1289_v38, %v1288_v30  ;;  %1369 = vmatpush3.bf16.xpose.msra.mxu1 %v1368_v27 }
 0x28d   : > { %1370 = vmatprep.subr.bf16.mxu1 %v1688_v28 }
 0x28e   : > { %v956_v33 = vadd.f32 %v1290_v32, %v2003_v39  ;;  %v985_v36 = vmax.f32 %v953_v31, 0.0 }
 0x290   : > { %v986_v37 = vmax.f32 %v956_v33, 0.0  ;;  %v1291_v40 = vpop.f32.mrb[24].mxu1 }
 0x291   : > { %v1292_v41 = vpop.f32.mrb[25].mxu1 }
 0x292   : > { %v1371_v42 = vpack.c.bf16 %v986_v37, %v985_v36  ;;  %v1293_v43 = vadd.f32 %v1292_v41, %v1291_v40  ;;  %v1294_v44 = vpop.f32.mrb[26].mxu1 }
 0x293   : > { %v1295_v45 = vpop.f32.mrb[27].mxu1 }
 0x294   : > { %v961_v46 = vadd.f32 %v1293_v43, %v2003_v39  ;;  %v1296_v47 = vadd.f32 %v1295_v45, %v1294_v44  ;;  %1372 = vmatpush3.bf16.xpose.msra.mxu1 %v1371_v42 }
 0x295   : > { %1373 = vmatprep.subr.bf16.mxu1 %v1688_v28 }
 0x296   : > { %v964_v48 = vadd.f32 %v1296_v47, %v2003_v39  ;;  %v987_v49 = vmax.f32 %v961_v46, 0.0 }
 0x298   : > { %v988_v50 = vmax.f32 %v964_v48, 0.0  ;;  %v1297_v51 = vpop.f32.mrb[28].mxu1 }
 0x299   : > { %v1298_v52 = vpop.f32.mrb[29].mxu1 }
 0x29a   : > { %v1374_v53 = vpack.c.bf16 %v988_v50, %v987_v49  ;;  %v1299_v54 = vadd.f32 %v1298_v52, %v1297_v51  ;;  %v1300_v55 = vpop.f32.mrb[30].mxu1 }
 0x29b   : > { %v1301_v56 = vpop.f32.mrb[31].mxu1 }
 0x29c   : > { %v969_v57 = vadd.f32 %v1299_v54, %v2003_v39  ;;  %v1302_v58 = vadd.f32 %v1301_v56, %v1300_v55  ;;  %1375 = vmatpush3.bf16.xpose.msra.mxu1 %v1374_v53 }
 0x29d   : > { %1376 = vmatprep.subr.bf16.mxu1 %v1688_v28 }
 0x29e   : > { %v972_v59 = vadd.f32 %v1302_v58, %v2003_v39  ;;  %v989_v60 = vmax.f32 %v969_v57, 0.0 }
 0x2a0   : > { %v990_v61 = vmax.f32 %v972_v59, 0.0 }
 0x2a2   : > { %v1377_v62 = vpack.c.bf16 %v990_v61, %v989_v60 }
 0x2a4   : > { %1378 = vmatpush3.bf16.xpose.msra.mxu1 %v1377_v62 }
 0x2ab   : > { %1353 = vmatmul.mubr.f32.vlgmr.msra.gmra.mrb[32].mxu1 %v991_v63 }
 0x37e   : > { %v1058_v28 = vpop.f32.mrb[32].mxu1 }
 0x37f   : > { %v1072_v39 = vadd.f32 %v1071_v1, %v1058_v28  ;;  %v1354_v2 = vpop.f32.mrb[33].mxu1 }
 0x381   : > { %1073 = vst [vmem:[%s327_s12] sm:$0x1] %v1072_v39 }
 0x382   : > { %1620 = shalt.err (!%p1617_p2)
}
 0x383   : > { %s1621_s18 = scalar_lea.hbm %s2038_s15, 16  ;;  %s1625_s23 = scalar_lea.hbm %s2089_s7, 32 }
 0x384   : > { %p1622_p13 = scmp.ne.s32.totalorder %s2038_s15, %s1621_s18  ;;  %p1626_p4 = scmp.lt.u32.totalorder %s2038_s15, %s2089_s7 }
 0x385   : > { %p1627_p7 = scmp.lt.u32.totalorder %s1625_s23, %s1621_s18  ;;  %p1629_p11 = scmp.lt.u32.totalorder %s1621_s18, %s2038_s15 }
 0x386   : > { %p1623_p6 = pnand %p1622_p13, %p2103_p0 }
 0x387   : > { %p1628_p8 = por %p1627_p7, %p1626_p4 }
 0x388   : > { %p1624_p10 = pneg %p1623_p6 }
 0x389   : > { %p1630_p1 = por %p1629_p11, %p1628_p8 }
 0x38b   : > { %p1631_p3 = pnand %p1630_p1, %p1624_p10 }
 0x38d   : > { %1634 = shalt.err (!%p1631_p3)
}
 0x38e   : > { %1389 = dma.vmem_to_hbm [thread:$0]  (%p2103_p0), %s2040_s11, 16, %s2038_s15, %s1075_s19  }
 0x38f PF: > { %s1099_s12 = sand.u32 1, %s1665_s26   ;;  %p2104_p5 = scmp.ne.s32.totalorder %s2094_s9, 0 }
 0x390   : > { %p2105_p9 = scmp.ge.s32.totalorder %s1677_s29, 2  ;;  %s1100_s25 = scalar_lea.sflag [#allocation5], %s1099_s12 }
 0x392   : > { %p1403_p12 = pnand %p2105_p9, %p2104_p5 }
 0x394   : > { %1660 = dma.done.wait (!%p1403_p12), %s1100_s25, 16  }
 0x395   : > { %1662 = vsyncadd (!%p1403_p12), %s1100_s25, 4294967280  ;;  %p23_p2 = scmp.ge.s32.totalorder %s1846_s30, 4   ;;  %s2106_s26 = smov %s1669_s27 }
 0x396   : > { %s2107_s27 = smov %s1673_s28  ;;  %s2108_s28 = smov %s1855_s16 }
 0x397   : > { %s2109_s29 = smov %s1846_s30  ;;  %25 = sbr.rel (!%p23_p2) target bundleno = 9 (0x9), region = 101 }
 0x39e   :  { %1104 = vsyncpa [#allocation4], 1 }
 0x39f   :  { %1106 = vsyncpa [#allocation4 + $0x1], 1 }
 0x3a0   :  { %1107 = vsyncpa [#allocation7], 1 }
 0x3a1   :  { %1108 = vsyncpa [#allocation5], 1 }
 0x3a2   :  { %1110 = vsyncpa [#allocation5 + $0x1], 1 }

</bundles_post_ra>
